<compile_context>
chip_gen: v6e
topology: v6e:2x2x1
jax: 0.10.0
libtpu: 0.0.40
codegen_flags: <defaults>
</compile_context>

<pallas_src>
import math
import jax
import jax.numpy as jnp
from jax.experimental import pallas as pl
from jax.experimental.pallas import tpu as pltpu

# ----------------------------- small synthetic BERT config -----------------
HIDDEN       = 32
NUM_HEADS    = 2
HEAD_DIM     = HIDDEN // NUM_HEADS
INTERMEDIATE = 64
NUM_LAYERS   = 2
VOCAB        = 50
MAX_POS      = 16
MAX_SPEAKERS = 100
NUM_LABELS   = 7
LN_EPS       = 1e-12
VEC_LANES    = 128     # lane-dense padding for packed vectors / logits


def _layer_norm(x, gamma, beta, eps=LN_EPS):
    mean = jnp.mean(x, axis=-1, keepdims=True)
    var = jnp.mean(jnp.square(x - mean), axis=-1, keepdims=True)
    return (x - mean) * jax.lax.rsqrt(var + eps) * gamma + beta


# ----------------------------- fused Pallas kernel ---------------------------
def fused_encoder_kernel(x_ref, mask_ref,
                         wqkv_ref, wo_ref, w1_ref, w2_ref, vec_ref,
                         wcls_ref, bcls_ref,
                         out_ref):
    """All BERT layers + classifier for one batch element (grid over batch)."""
    x = x_ref[0]                          # (S, H)  float32
    add_mask = mask_ref[0]                # (1, S)  additive mask (0 or -1e9)
    scale = 1.0 / math.sqrt(HEAD_DIM)

    for l in range(NUM_LAYERS):           # statically unrolled (NUM_LAYERS=2)
        vecs = vec_ref[l]                 # (8, 128) packed per-layer vectors
        bqkv = vecs[0:1, :3 * HIDDEN]
        bo   = vecs[1:2, :HIDDEN]
        ln1g = vecs[2:3, :HIDDEN]
        ln1b = vecs[3:4, :HIDDEN]
        b1   = vecs[4:5, :INTERMEDIATE]
        b2   = vecs[5:6, :HIDDEN]
        ln2g = vecs[6:7, :HIDDEN]
        ln2b = vecs[7:8, :HIDDEN]

        # ---- self-attention (all heads batched) ----
        qkv = jnp.dot(x.astype(jnp.bfloat16), wqkv_ref[l],
                      preferred_element_type=jnp.float32) + bqkv      # (S, 3H)
        heads = jnp.stack(
            [qkv[:, i * HEAD_DIM:(i + 1) * HEAD_DIM]
             for i in range(3 * NUM_HEADS)], axis=0)                  # (3*NH,S,hd)
        heads = heads.astype(jnp.bfloat16)
        q = heads[:NUM_HEADS]
        k = heads[NUM_HEADS:2 * NUM_HEADS]
        v = heads[2 * NUM_HEADS:]

        scores = jnp.einsum('hqd,hkd->hqk', q, k,
                            preferred_element_type=jnp.float32) * scale  # (NH,S,S)
        scores = scores + add_mask                                       # +(1,S)
        m = jnp.max(scores, axis=-1, keepdims=True)
        p = jnp.exp(scores - m)
        p = p * pl.reciprocal(jnp.sum(p, axis=-1, keepdims=True), approx=True)
        ctx = jnp.einsum('hqk,hkd->hqd', p.astype(jnp.bfloat16), v,
                         preferred_element_type=jnp.float32)             # (NH,S,hd)
        # concat-of-heads @ Wo  ==  sum_h ctx_h @ Wo_h   (Wo stored (NH,hd,H))
        proj = jax.lax.dot_general(
            ctx.astype(jnp.bfloat16), wo_ref[l],
            dimension_numbers=(((2,), (1,)), ((0,), (0,))),
            preferred_element_type=jnp.float32)                          # (NH,S,H)
        attn = jnp.sum(proj, axis=0) + bo                                # (S,H)

        x1 = _layer_norm(x + attn, ln1g, ln1b)

        # ---- feed-forward ----
        hmid = jnp.dot(x1.astype(jnp.bfloat16), w1_ref[l],
                       preferred_element_type=jnp.float32) + b1
        # TODO(synk): HF BERT uses exact erf-GELU; tanh-approx GELU used here.
        hmid = jax.nn.gelu(hmid, approximate=True)
        ffn = jnp.dot(hmid.astype(jnp.bfloat16), w2_ref[l],
                      preferred_element_type=jnp.float32) + b2
        x = _layer_norm(x1 + ffn, ln2g, ln2b)

    # ---- fused classifier head, lane-dense (padded to 128 output lanes) ----
    logits = jnp.dot(x.astype(jnp.bfloat16), wcls_ref[...],
                     preferred_element_type=jnp.float32) + bcls_ref[...]  # (S,128)
    out_ref[0] = logits.astype(out_ref.dtype)


# ----------------------------- Pallas wrapper --------------------------------
def _full_spec(arr):
    nd = arr.ndim
    return pl.BlockSpec(arr.shape, lambda b, _n=nd: (0,) * _n)


def run_fused_model(x, add_mask, params):
    B, S, H = x.shape
    weights = [params['wqkv'], params['wo'], params['w1'], params['w2'],
               params['vecs'], params['cls_w'], params['cls_b']]
    return pl.pallas_call(
        fused_encoder_kernel,
        out_shape=jax.ShapeDtypeStruct((B, S, VEC_LANES), jnp.float32),
        grid=(B,),
        in_specs=[pl.BlockSpec((1, S, H), lambda b: (b, 0, 0)),
                  pl.BlockSpec((1, 1, S), lambda b: (b, 0, 0))]
                 + [_full_spec(w) for w in weights],
        out_specs=pl.BlockSpec((1, S, VEC_LANES), lambda b: (b, 0, 0)),
        compiler_params=pltpu.CompilerParams(
            dimension_semantics=("parallel",)),
    )(x, add_mask, *weights)


# ----------------------------- parameters ------------------------------------
def init_params(key):
    keys = iter(jax.random.split(key, 16))

    def nrm(shape, dtype=jnp.float32):
        return (0.02 * jax.random.normal(next(keys), shape)).astype(dtype)

    params = {
        'word_emb':    nrm((VOCAB, HIDDEN)),
        'pos_emb':     nrm((MAX_POS, HIDDEN)),
        'type_emb':    nrm((2, HIDDEN)),
        'emb_ln_g':    jnp.ones((1, HIDDEN), jnp.float32),
        'emb_ln_b':    jnp.zeros((1, HIDDEN), jnp.float32),
        'speaker_emb': nrm((MAX_SPEAKERS, HIDDEN)),
        # stacked encoder weights, bf16 on the MXU path
        'wqkv': nrm((NUM_LAYERS, HIDDEN, 3 * HIDDEN), jnp.bfloat16),
        'wo':   nrm((NUM_LAYERS, NUM_HEADS, HEAD_DIM, HIDDEN), jnp.bfloat16),
        'w1':   nrm((NUM_LAYERS, HIDDEN, INTERMEDIATE), jnp.bfloat16),
        'w2':   nrm((NUM_LAYERS, INTERMEDIATE, HIDDEN), jnp.bfloat16),
    }
    # packed per-layer vectors, rows: 0=bqkv 1=bo 2=ln1g 3=ln1b 4=b1 5=b2 6=ln2g 7=ln2b
    vecs = jnp.zeros((NUM_LAYERS, 8, VEC_LANES), jnp.float32)
    vecs = vecs.at[:, 2, :HIDDEN].set(1.0)   # ln1 gamma = 1
    vecs = vecs.at[:, 6, :HIDDEN].set(1.0)   # ln2 gamma = 1
    params['vecs'] = vecs
    # classifier, lane-padded to 128 output lanes
    cls_w = nrm((HIDDEN, NUM_LABELS))
    wpad = jnp.zeros((HIDDEN, VEC_LANES), jnp.float32).at[:, :NUM_LABELS].set(cls_w)
    params['cls_w'] = wpad.astype(jnp.bfloat16)
    params['cls_b'] = jnp.zeros((1, VEC_LANES), jnp.float32)
    return params


# ----------------------------- forward (glue + fused kernel) -----------------
def bert_embeddings(params, input_ids):
    B, S = input_ids.shape
    word = jnp.take(params['word_emb'], input_ids, axis=0)           # (B,S,H)
    pos = params['pos_emb'][:S][None, :, :]                          # (1,S,H)
    tok = params['type_emb'][0][None, None, :]                       # token_type_ids = 0
    e = word + pos + tok
    return _layer_norm(e, params['emb_ln_g'], params['emb_ln_b'])


def forward(params, input_ids, speaker_ids, attention_mask, mask_position):
    # bert.embeddings(input_ids) + SpeakerEmbeddingLayer(speaker_ids)
    emb = bert_embeddings(params, input_ids)
    emb = emb + jnp.take(params['speaker_emb'], speaker_ids, axis=0)

    # get_extended_attention_mask: (1 - mask) * large_negative, additive
    add_mask = ((1.0 - attention_mask.astype(jnp.float32)) * -1e9)[:, None, :]  # (B,1,S)

    # Fused encoder (all layers) + classifier head in one pallas_call.
    logits = run_fused_model(emb.astype(jnp.float32), add_mask, params)
    logits = logits[..., :NUM_LABELS]                                # (B,S,7)

    # per-batch index_select at mask_position -> one shape-stable flat gather
    batch_idx = jnp.asarray([i for i, row in enumerate(mask_position) for _ in row],
                            jnp.int32)
    pos_idx = jnp.asarray([p for row in mask_position for p in row], jnp.int32)
    return logits[batch_idx, pos_idx]                                # (total, 7)


# ----------------------------- main -------------------------------------------
if __name__ == "__main__":
    key = jax.random.PRNGKey(0)
    kp, ki, ks = jax.random.split(key, 3)

    params = init_params(kp)

    B, S = 2, 8
    input_ids = jax.random.randint(ki, (B, S), 0, VOCAB, dtype=jnp.int32)
    speaker_ids = jax.random.randint(ks, (B, S), 0, MAX_SPEAKERS, dtype=jnp.int32)
    attention_mask = jnp.array([[1, 1, 1, 1, 1, 1, 1, 1],
                                [1, 1, 1, 1, 1, 1, 0, 0]], dtype=jnp.int32)
    mask_position = [[1, 3], [0, 4, 5]]   # python list of per-dialogue [MASK] positions

    out = forward(params, input_ids, speaker_ids, attention_mask, mask_position)
    out = jax.block_until_ready(out)

    expected_rows = sum(len(m) for m in mask_position)
    assert out.shape == (expected_rows, NUM_LABELS), out.shape
    assert bool(jnp.all(jnp.isfinite(out)))
    print("KERNEL_OK")
</pallas_src>

<mosaic_0001>
module attributes {stable_mosaic.version = 11 : i64} {
  func.func @fused_encoder_kernel(%arg0: i32, %arg1: memref<1x8x32xf32, #tpu.memory_space<vmem>>, %arg2: memref<1x1x8xf32, #tpu.memory_space<vmem>>, %arg3: memref<2x32x96xbf16, #tpu.memory_space<vmem>>, %arg4: memref<2x2x16x32xbf16, #tpu.memory_space<vmem>>, %arg5: memref<2x32x64xbf16, #tpu.memory_space<vmem>>, %arg6: memref<2x64x32xbf16, #tpu.memory_space<vmem>>, %arg7: memref<2x8x128xf32, #tpu.memory_space<vmem>>, %arg8: memref<32x128xbf16, #tpu.memory_space<vmem>>, %arg9: memref<1x128xf32, #tpu.memory_space<vmem>>, %arg10: memref<1x8x128xf32, #tpu.memory_space<vmem>>) attributes {dimension_semantics = [#tpu.dimension_semantics<parallel>], iteration_bounds = array<i64: 2>, scalar_prefetch = 0 : i64, scratch_operands = 0 : i64, tpu.core_type = #tpu.core_type<tc>, window_params = [{transform_indices = @transform_0, window_bounds = array<i64: 1, 8, 32>}, {transform_indices = @transform_1, window_bounds = array<i64: 1, 1, 8>}, {pipeline_mode = #tpu.pipeline_mode<synchronous>, transform_indices = @transform_2, window_bounds = array<i64: 2, 32, 96>}, {pipeline_mode = #tpu.pipeline_mode<synchronous>, transform_indices = @transform_3, window_bounds = array<i64: 2, 2, 16, 32>}, {pipeline_mode = #tpu.pipeline_mode<synchronous>, transform_indices = @transform_4, window_bounds = array<i64: 2, 32, 64>}, {pipeline_mode = #tpu.pipeline_mode<synchronous>, transform_indices = @transform_5, window_bounds = array<i64: 2, 64, 32>}, {pipeline_mode = #tpu.pipeline_mode<synchronous>, transform_indices = @transform_6, window_bounds = array<i64: 2, 8, 128>}, {pipeline_mode = #tpu.pipeline_mode<synchronous>, transform_indices = @transform_7, window_bounds = array<i64: 32, 128>}, {pipeline_mode = #tpu.pipeline_mode<synchronous>, transform_indices = @transform_8, window_bounds = array<i64: 1, 128>}, {transform_indices = @transform_9, window_bounds = array<i64: 1, 8, 128>}]} {
    %c0 = arith.constant 0 : index
    %c0_0 = arith.constant 0 : index
    %c0_1 = arith.constant 0 : index
    %0 = vector.load %arg1[%c0, %c0_0, %c0_1] : memref<1x8x32xf32, #tpu.memory_space<vmem>>, vector<1x8x32xf32>
    %1 = vector.shape_cast %0 : vector<1x8x32xf32> to vector<8x32xf32>
    %c0_2 = arith.constant 0 : index
    %c0_3 = arith.constant 0 : index
    %c0_4 = arith.constant 0 : index
    %2 = vector.load %arg2[%c0_2, %c0_3, %c0_4] : memref<1x1x8xf32, #tpu.memory_space<vmem>>, vector<1x1x8xf32>
    %3 = vector.shape_cast %2 : vector<1x1x8xf32> to vector<1x8xf32>
    %c0_5 = arith.constant 0 : index
    %c0_6 = arith.constant 0 : index
    %c0_7 = arith.constant 0 : index
    %4 = vector.load %arg7[%c0_5, %c0_6, %c0_7] : memref<2x8x128xf32, #tpu.memory_space<vmem>>, vector<1x8x128xf32>
    %5 = vector.shape_cast %4 : vector<1x8x128xf32> to vector<8x128xf32>
    %6 = vector.extract_strided_slice %5 {offsets = [0, 0], sizes = [1, 96], strides = [1, 1]} : vector<8x128xf32> to vector<1x96xf32>
    %7 = vector.extract_strided_slice %5 {offsets = [1, 0], sizes = [1, 32], strides = [1, 1]} : vector<8x128xf32> to vector<1x32xf32>
    %8 = vector.extract_strided_slice %5 {offsets = [2, 0], sizes = [1, 32], strides = [1, 1]} : vector<8x128xf32> to vector<1x32xf32>
    %9 = vector.extract_strided_slice %5 {offsets = [3, 0], sizes = [1, 32], strides = [1, 1]} : vector<8x128xf32> to vector<1x32xf32>
    %10 = vector.extract_strided_slice %5 {offsets = [4, 0], sizes = [1, 64], strides = [1, 1]} : vector<8x128xf32> to vector<1x64xf32>
    %11 = vector.extract_strided_slice %5 {offsets = [5, 0], sizes = [1, 32], strides = [1, 1]} : vector<8x128xf32> to vector<1x32xf32>
    %12 = vector.extract_strided_slice %5 {offsets = [6, 0], sizes = [1, 32], strides = [1, 1]} : vector<8x128xf32> to vector<1x32xf32>
    %13 = vector.extract_strided_slice %5 {offsets = [7, 0], sizes = [1, 32], strides = [1, 1]} : vector<8x128xf32> to vector<1x32xf32>
    %14 = arith.truncf %1 : vector<8x32xf32> to vector<8x32xbf16>
    %c0_8 = arith.constant 0 : index
    %c0_9 = arith.constant 0 : index
    %c0_10 = arith.constant 0 : index
    %15 = vector.load %arg3[%c0_8, %c0_9, %c0_10] : memref<2x32x96xbf16, #tpu.memory_space<vmem>>, vector<1x32x96xbf16>
    %16 = vector.shape_cast %15 : vector<1x32x96xbf16> to vector<32x96xbf16>
    %cst = arith.constant dense<0.000000e+00> : vector<8x96xf32>
    %17 = tpu.matmul %14, %16, %cst {dimension_numbers = #tpu.dot_dimension_numbers<[1], [0], [0], [1], [0, 0, 1, 1], [], []>} : vector<8x32xbf16>, vector<32x96xbf16>, vector<8x96xf32> -> vector<8x96xf32>
    %18 = vector.broadcast %6 : vector<1x96xf32> to vector<8x96xf32>
    %19 = arith.addf %17, %18 : vector<8x96xf32>
    %20 = vector.extract_strided_slice %19 {offsets = [0, 0], sizes = [8, 16], strides = [1, 1]} : vector<8x96xf32> to vector<8x16xf32>
    %21 = vector.extract_strided_slice %19 {offsets = [0, 16], sizes = [8, 16], strides = [1, 1]} : vector<8x96xf32> to vector<8x16xf32>
    %22 = vector.extract_strided_slice %19 {offsets = [0, 32], sizes = [8, 16], strides = [1, 1]} : vector<8x96xf32> to vector<8x16xf32>
    %23 = vector.extract_strided_slice %19 {offsets = [0, 48], sizes = [8, 16], strides = [1, 1]} : vector<8x96xf32> to vector<8x16xf32>
    %24 = vector.extract_strided_slice %19 {offsets = [0, 64], sizes = [8, 16], strides = [1, 1]} : vector<8x96xf32> to vector<8x16xf32>
    %25 = vector.extract_strided_slice %19 {offsets = [0, 80], sizes = [8, 16], strides = [1, 1]} : vector<8x96xf32> to vector<8x16xf32>
    %26 = vector.shape_cast %20 : vector<8x16xf32> to vector<1x8x16xf32>
    %27 = vector.shape_cast %21 : vector<8x16xf32> to vector<1x8x16xf32>
    %28 = vector.shape_cast %22 : vector<8x16xf32> to vector<1x8x16xf32>
    %29 = vector.shape_cast %23 : vector<8x16xf32> to vector<1x8x16xf32>
    %30 = vector.shape_cast %24 : vector<8x16xf32> to vector<1x8x16xf32>
    %31 = vector.shape_cast %25 : vector<8x16xf32> to vector<1x8x16xf32>
    %32 = tpu.concatenate %26, %27, %28, %29, %30, %31 in 0 : vector<1x8x16xf32>, vector<1x8x16xf32>, vector<1x8x16xf32>, vector<1x8x16xf32>, vector<1x8x16xf32>, vector<1x8x16xf32> -> vector<6x8x16xf32>
    %33 = arith.truncf %32 : vector<6x8x16xf32> to vector<6x8x16xbf16>
    %34 = vector.extract_strided_slice %33 {offsets = [0, 0, 0], sizes = [2, 8, 16], strides = [1, 1, 1]} : vector<6x8x16xbf16> to vector<2x8x16xbf16>
    %35 = vector.extract_strided_slice %33 {offsets = [2, 0, 0], sizes = [2, 8, 16], strides = [1, 1, 1]} : vector<6x8x16xbf16> to vector<2x8x16xbf16>
    %36 = vector.extract_strided_slice %33 {offsets = [4, 0, 0], sizes = [2, 8, 16], strides = [1, 1, 1]} : vector<6x8x16xbf16> to vector<2x8x16xbf16>
    "tpu.trace_start"() <{level = 10 : i32, message = "hqd,hkd->hqk"}> : () -> ()
    %cst_11 = arith.constant dense<0.000000e+00> : vector<2x8x8xf32>
    %37 = tpu.matmul %34, %35, %cst_11 {dimension_numbers = #tpu.dot_dimension_numbers<[2], [2], [1], [1], [0, 0, 0, 1, 1, 1], [0], [0]>} : vector<2x8x16xbf16>, vector<2x8x16xbf16>, vector<2x8x8xf32> -> vector<2x8x8xf32>
    "tpu.trace_stop"() : () -> ()
    %cst_12 = arith.constant 2.500000e-01 : f32
    %38 = vector.broadcast %cst_12 : f32 to vector<2x8x8xf32>
    %39 = arith.mulf %37, %38 : vector<2x8x8xf32>
    %40 = vector.shape_cast %3 : vector<1x8xf32> to vector<1x1x8xf32>
    %41 = vector.broadcast %40 : vector<1x1x8xf32> to vector<2x8x8xf32>
    %42 = arith.addf %39, %41 : vector<2x8x8xf32>
    %cst_13 = arith.constant dense<0xFF800000> : vector<2x8xf32>
    %43 = vector.multi_reduction <maximumf>, %42, %cst_13 [2] : vector<2x8x8xf32> to vector<2x8xf32>
    %44 = vector.shape_cast %43 : vector<2x8xf32> to vector<2x8x1xf32>
    %45 = vector.broadcast %44 : vector<2x8x1xf32> to vector<2x8x8xf32>
    %46 = arith.subf %42, %45 : vector<2x8x8xf32>
    %47 = math.exp %46 : vector<2x8x8xf32>
    %cst_14 = arith.constant dense<0.000000e+00> : vector<2x8xf32>
    %48 = vector.multi_reduction <add>, %47, %cst_14 [2] : vector<2x8x8xf32> to vector<2x8xf32>
    %49 = vector.shape_cast %48 : vector<2x8xf32> to vector<2x8x1xf32>
    %50 = tpu.reciprocal %49 {approx = true} : vector<2x8x1xf32> -> vector<2x8x1xf32>
    %51 = vector.broadcast %50 : vector<2x8x1xf32> to vector<2x8x8xf32>
    %52 = arith.mulf %47, %51 : vector<2x8x8xf32>
    %53 = arith.truncf %52 : vector<2x8x8xf32> to vector<2x8x8xbf16>
    "tpu.trace_start"() <{level = 10 : i32, message = "hqk,hkd->hqd"}> : () -> ()
    %cst_15 = arith.constant dense<0.000000e+00> : vector<2x8x16xf32>
    %54 = tpu.matmul %53, %36, %cst_15 {dimension_numbers = #tpu.dot_dimension_numbers<[2], [1], [1], [2], [0, 0, 0, 1, 1, 2], [0], [0]>} : vector<2x8x8xbf16>, vector<2x8x16xbf16>, vector<2x8x16xf32> -> vector<2x8x16xf32>
    "tpu.trace_stop"() : () -> ()
    %55 = arith.truncf %54 : vector<2x8x16xf32> to vector<2x8x16xbf16>
    %c0_16 = arith.constant 0 : index
    %c0_17 = arith.constant 0 : index
    %c0_18 = arith.constant 0 : index
    %c0_19 = arith.constant 0 : index
    %56 = vector.load %arg4[%c0_16, %c0_17, %c0_18, %c0_19] : memref<2x2x16x32xbf16, #tpu.memory_space<vmem>>, vector<1x2x16x32xbf16>
    %57 = vector.shape_cast %56 : vector<1x2x16x32xbf16> to vector<2x16x32xbf16>
    %cst_20 = arith.constant dense<0.000000e+00> : vector<2x8x32xf32>
    %58 = tpu.matmul %55, %57, %cst_20 {dimension_numbers = #tpu.dot_dimension_numbers<[2], [1], [1], [2], [0, 0, 0, 1, 1, 2], [0], [0]>} : vector<2x8x16xbf16>, vector<2x16x32xbf16>, vector<2x8x32xf32> -> vector<2x8x32xf32>
    %cst_21 = arith.constant dense<0.000000e+00> : vector<8x32xf32>
    %59 = vector.multi_reduction <add>, %58, %cst_21 [0] : vector<2x8x32xf32> to vector<8x32xf32>
    %60 = vector.broadcast %7 : vector<1x32xf32> to vector<8x32xf32>
    %61 = arith.addf %59, %60 : vector<8x32xf32>
    %62 = arith.addf %1, %61 : vector<8x32xf32>
    %cst_22 = arith.constant dense<0.000000e+00> : vector<8xf32>
    %63 = vector.multi_reduction <add>, %62, %cst_22 [1] : vector<8x32xf32> to vector<8xf32>
    %64 = vector.shape_cast %63 : vector<8xf32> to vector<8x1xf32>
    %cst_23 = arith.constant 3.200000e+01 : f32
    %65 = vector.broadcast %cst_23 : f32 to vector<8x1xf32>
    %66 = arith.divf %64, %65 : vector<8x1xf32>
    %67 = vector.broadcast %66 : vector<8x1xf32> to vector<8x32xf32>
    %68 = arith.subf %62, %67 : vector<8x32xf32>
    %69 = arith.mulf %68, %68 : vector<8x32xf32>
    %cst_24 = arith.constant dense<0.000000e+00> : vector<8xf32>
    %70 = vector.multi_reduction <add>, %69, %cst_24 [1] : vector<8x32xf32> to vector<8xf32>
    %71 = vector.shape_cast %70 : vector<8xf32> to vector<8x1xf32>
    %cst_25 = arith.constant 3.200000e+01 : f32
    %72 = vector.broadcast %cst_25 : f32 to vector<8x1xf32>
    %73 = arith.divf %71, %72 : vector<8x1xf32>
    %74 = vector.broadcast %66 : vector<8x1xf32> to vector<8x32xf32>
    %75 = arith.subf %62, %74 : vector<8x32xf32>
    %cst_26 = arith.constant 9.99999996E-13 : f32
    %76 = vector.broadcast %cst_26 : f32 to vector<8x1xf32>
    %77 = arith.addf %73, %76 : vector<8x1xf32>
    %78 = math.rsqrt %77 : vector<8x1xf32>
    %79 = vector.broadcast %78 : vector<8x1xf32> to vector<8x32xf32>
    %80 = arith.mulf %75, %79 : vector<8x32xf32>
    %81 = vector.broadcast %8 : vector<1x32xf32> to vector<8x32xf32>
    %82 = arith.mulf %80, %81 : vector<8x32xf32>
    %83 = vector.broadcast %9 : vector<1x32xf32> to vector<8x32xf32>
    %84 = arith.addf %82, %83 : vector<8x32xf32>
    %85 = arith.truncf %84 : vector<8x32xf32> to vector<8x32xbf16>
    %c0_27 = arith.constant 0 : index
    %c0_28 = arith.constant 0 : index
    %c0_29 = arith.constant 0 : index
    %86 = vector.load %arg5[%c0_27, %c0_28, %c0_29] : memref<2x32x64xbf16, #tpu.memory_space<vmem>>, vector<1x32x64xbf16>
    %87 = vector.shape_cast %86 : vector<1x32x64xbf16> to vector<32x64xbf16>
    %cst_30 = arith.constant dense<0.000000e+00> : vector<8x64xf32>
    %88 = tpu.matmul %85, %87, %cst_30 {dimension_numbers = #tpu.dot_dimension_numbers<[1], [0], [0], [1], [0, 0, 1, 1], [], []>} : vector<8x32xbf16>, vector<32x64xbf16>, vector<8x64xf32> -> vector<8x64xf32>
    %89 = vector.broadcast %10 : vector<1x64xf32> to vector<8x64xf32>
    %90 = arith.addf %88, %89 : vector<8x64xf32>
    %91 = arith.mulf %90, %90 : vector<8x64xf32>
    %92 = arith.mulf %90, %91 : vector<8x64xf32>
    %cst_31 = arith.constant 4.471500e-02 : f32
    %93 = vector.broadcast %cst_31 : f32 to vector<8x64xf32>
    %94 = arith.mulf %93, %92 : vector<8x64xf32>
    %95 = arith.addf %90, %94 : vector<8x64xf32>
    %cst_32 = arith.constant 0.797884583 : f32
    %96 = vector.broadcast %cst_32 : f32 to vector<8x64xf32>
    %97 = arith.mulf %96, %95 : vector<8x64xf32>
    %98 = math.tanh %97 : vector<8x64xf32>
    %cst_33 = arith.constant 1.000000e+00 : f32
    %99 = vector.broadcast %cst_33 : f32 to vector<8x64xf32>
    %100 = arith.addf %99, %98 : vector<8x64xf32>
    %cst_34 = arith.constant 5.000000e-01 : f32
    %101 = vector.broadcast %cst_34 : f32 to vector<8x64xf32>
    %102 = arith.mulf %101, %100 : vector<8x64xf32>
    %103 = arith.mulf %90, %102 : vector<8x64xf32>
    %104 = arith.truncf %103 : vector<8x64xf32> to vector<8x64xbf16>
    %c0_35 = arith.constant 0 : index
    %c0_36 = arith.constant 0 : index
    %c0_37 = arith.constant 0 : index
    %105 = vector.load %arg6[%c0_35, %c0_36, %c0_37] : memref<2x64x32xbf16, #tpu.memory_space<vmem>>, vector<1x64x32xbf16>
    %106 = vector.shape_cast %105 : vector<1x64x32xbf16> to vector<64x32xbf16>
    %cst_38 = arith.constant dense<0.000000e+00> : vector<8x32xf32>
    %107 = tpu.matmul %104, %106, %cst_38 {dimension_numbers = #tpu.dot_dimension_numbers<[1], [0], [0], [1], [0, 0, 1, 1], [], []>} : vector<8x64xbf16>, vector<64x32xbf16>, vector<8x32xf32> -> vector<8x32xf32>
    %108 = vector.broadcast %11 : vector<1x32xf32> to vector<8x32xf32>
    %109 = arith.addf %107, %108 : vector<8x32xf32>
    %110 = arith.addf %84, %109 : vector<8x32xf32>
    %cst_39 = arith.constant dense<0.000000e+00> : vector<8xf32>
    %111 = vector.multi_reduction <add>, %110, %cst_39 [1] : vector<8x32xf32> to vector<8xf32>
    %112 = vector.shape_cast %111 : vector<8xf32> to vector<8x1xf32>
    %cst_40 = arith.constant 3.200000e+01 : f32
    %113 = vector.broadcast %cst_40 : f32 to vector<8x1xf32>
    %114 = arith.divf %112, %113 : vector<8x1xf32>
    %115 = vector.broadcast %114 : vector<8x1xf32> to vector<8x32xf32>
    %116 = arith.subf %110, %115 : vector<8x32xf32>
    %117 = arith.mulf %116, %116 : vector<8x32xf32>
    %cst_41 = arith.constant dense<0.000000e+00> : vector<8xf32>
    %118 = vector.multi_reduction <add>, %117, %cst_41 [1] : vector<8x32xf32> to vector<8xf32>
    %119 = vector.shape_cast %118 : vector<8xf32> to vector<8x1xf32>
    %cst_42 = arith.constant 3.200000e+01 : f32
    %120 = vector.broadcast %cst_42 : f32 to vector<8x1xf32>
    %121 = arith.divf %119, %120 : vector<8x1xf32>
    %122 = vector.broadcast %114 : vector<8x1xf32> to vector<8x32xf32>
    %123 = arith.subf %110, %122 : vector<8x32xf32>
    %cst_43 = arith.constant 9.99999996E-13 : f32
    %124 = vector.broadcast %cst_43 : f32 to vector<8x1xf32>
    %125 = arith.addf %121, %124 : vector<8x1xf32>
    %126 = math.rsqrt %125 : vector<8x1xf32>
    %127 = vector.broadcast %126 : vector<8x1xf32> to vector<8x32xf32>
    %128 = arith.mulf %123, %127 : vector<8x32xf32>
    %129 = vector.broadcast %12 : vector<1x32xf32> to vector<8x32xf32>
    %130 = arith.mulf %128, %129 : vector<8x32xf32>
    %131 = vector.broadcast %13 : vector<1x32xf32> to vector<8x32xf32>
    %132 = arith.addf %130, %131 : vector<8x32xf32>
    %c1 = arith.constant 1 : index
    %c0_44 = arith.constant 0 : index
    %c0_45 = arith.constant 0 : index
    %133 = vector.load %arg7[%c1, %c0_44, %c0_45] : memref<2x8x128xf32, #tpu.memory_space<vmem>>, vector<1x8x128xf32>
    %134 = vector.shape_cast %133 : vector<1x8x128xf32> to vector<8x128xf32>
    %135 = vector.extract_strided_slice %134 {offsets = [0, 0], sizes = [1, 96], strides = [1, 1]} : vector<8x128xf32> to vector<1x96xf32>
    %136 = vector.extract_strided_slice %134 {offsets = [1, 0], sizes = [1, 32], strides = [1, 1]} : vector<8x128xf32> to vector<1x32xf32>
    %137 = vector.extract_strided_slice %134 {offsets = [2, 0], sizes = [1, 32], strides = [1, 1]} : vector<8x128xf32> to vector<1x32xf32>
    %138 = vector.extract_strided_slice %134 {offsets = [3, 0], sizes = [1, 32], strides = [1, 1]} : vector<8x128xf32> to vector<1x32xf32>
    %139 = vector.extract_strided_slice %134 {offsets = [4, 0], sizes = [1, 64], strides = [1, 1]} : vector<8x128xf32> to vector<1x64xf32>
    %140 = vector.extract_strided_slice %134 {offsets = [5, 0], sizes = [1, 32], strides = [1, 1]} : vector<8x128xf32> to vector<1x32xf32>
    %141 = vector.extract_strided_slice %134 {offsets = [6, 0], sizes = [1, 32], strides = [1, 1]} : vector<8x128xf32> to vector<1x32xf32>
    %142 = vector.extract_strided_slice %134 {offsets = [7, 0], sizes = [1, 32], strides = [1, 1]} : vector<8x128xf32> to vector<1x32xf32>
    %143 = arith.truncf %132 : vector<8x32xf32> to vector<8x32xbf16>
    %c1_46 = arith.constant 1 : index
    %c0_47 = arith.constant 0 : index
    %c0_48 = arith.constant 0 : index
    %144 = vector.load %arg3[%c1_46, %c0_47, %c0_48] : memref<2x32x96xbf16, #tpu.memory_space<vmem>>, vector<1x32x96xbf16>
    %145 = vector.shape_cast %144 : vector<1x32x96xbf16> to vector<32x96xbf16>
    %cst_49 = arith.constant dense<0.000000e+00> : vector<8x96xf32>
    %146 = tpu.matmul %143, %145, %cst_49 {dimension_numbers = #tpu.dot_dimension_numbers<[1], [0], [0], [1], [0, 0, 1, 1], [], []>} : vector<8x32xbf16>, vector<32x96xbf16>, vector<8x96xf32> -> vector<8x96xf32>
    %147 = vector.broadcast %135 : vector<1x96xf32> to vector<8x96xf32>
    %148 = arith.addf %146, %147 : vector<8x96xf32>
    %149 = vector.extract_strided_slice %148 {offsets = [0, 0], sizes = [8, 16], strides = [1, 1]} : vector<8x96xf32> to vector<8x16xf32>
    %150 = vector.extract_strided_slice %148 {offsets = [0, 16], sizes = [8, 16], strides = [1, 1]} : vector<8x96xf32> to vector<8x16xf32>
    %151 = vector.extract_strided_slice %148 {offsets = [0, 32], sizes = [8, 16], strides = [1, 1]} : vector<8x96xf32> to vector<8x16xf32>
    %152 = vector.extract_strided_slice %148 {offsets = [0, 48], sizes = [8, 16], strides = [1, 1]} : vector<8x96xf32> to vector<8x16xf32>
    %153 = vector.extract_strided_slice %148 {offsets = [0, 64], sizes = [8, 16], strides = [1, 1]} : vector<8x96xf32> to vector<8x16xf32>
    %154 = vector.extract_strided_slice %148 {offsets = [0, 80], sizes = [8, 16], strides = [1, 1]} : vector<8x96xf32> to vector<8x16xf32>
    %155 = vector.shape_cast %149 : vector<8x16xf32> to vector<1x8x16xf32>
    %156 = vector.shape_cast %150 : vector<8x16xf32> to vector<1x8x16xf32>
    %157 = vector.shape_cast %151 : vector<8x16xf32> to vector<1x8x16xf32>
    %158 = vector.shape_cast %152 : vector<8x16xf32> to vector<1x8x16xf32>
    %159 = vector.shape_cast %153 : vector<8x16xf32> to vector<1x8x16xf32>
    %160 = vector.shape_cast %154 : vector<8x16xf32> to vector<1x8x16xf32>
    %161 = tpu.concatenate %155, %156, %157, %158, %159, %160 in 0 : vector<1x8x16xf32>, vector<1x8x16xf32>, vector<1x8x16xf32>, vector<1x8x16xf32>, vector<1x8x16xf32>, vector<1x8x16xf32> -> vector<6x8x16xf32>
    %162 = arith.truncf %161 : vector<6x8x16xf32> to vector<6x8x16xbf16>
    %163 = vector.extract_strided_slice %162 {offsets = [0, 0, 0], sizes = [2, 8, 16], strides = [1, 1, 1]} : vector<6x8x16xbf16> to vector<2x8x16xbf16>
    %164 = vector.extract_strided_slice %162 {offsets = [2, 0, 0], sizes = [2, 8, 16], strides = [1, 1, 1]} : vector<6x8x16xbf16> to vector<2x8x16xbf16>
    %165 = vector.extract_strided_slice %162 {offsets = [4, 0, 0], sizes = [2, 8, 16], strides = [1, 1, 1]} : vector<6x8x16xbf16> to vector<2x8x16xbf16>
    "tpu.trace_start"() <{level = 10 : i32, message = "hqd,hkd->hqk"}> : () -> ()
    %cst_50 = arith.constant dense<0.000000e+00> : vector<2x8x8xf32>
    %166 = tpu.matmul %163, %164, %cst_50 {dimension_numbers = #tpu.dot_dimension_numbers<[2], [2], [1], [1], [0, 0, 0, 1, 1, 1], [0], [0]>} : vector<2x8x16xbf16>, vector<2x8x16xbf16>, vector<2x8x8xf32> -> vector<2x8x8xf32>
    "tpu.trace_stop"() : () -> ()
    %cst_51 = arith.constant 2.500000e-01 : f32
    %167 = vector.broadcast %cst_51 : f32 to vector<2x8x8xf32>
    %168 = arith.mulf %166, %167 : vector<2x8x8xf32>
    %169 = vector.shape_cast %3 : vector<1x8xf32> to vector<1x1x8xf32>
    %170 = vector.broadcast %169 : vector<1x1x8xf32> to vector<2x8x8xf32>
    %171 = arith.addf %168, %170 : vector<2x8x8xf32>
    %cst_52 = arith.constant dense<0xFF800000> : vector<2x8xf32>
    %172 = vector.multi_reduction <maximumf>, %171, %cst_52 [2] : vector<2x8x8xf32> to vector<2x8xf32>
    %173 = vector.shape_cast %172 : vector<2x8xf32> to vector<2x8x1xf32>
    %174 = vector.broadcast %173 : vector<2x8x1xf32> to vector<2x8x8xf32>
    %175 = arith.subf %171, %174 : vector<2x8x8xf32>
    %176 = math.exp %175 : vector<2x8x8xf32>
    %cst_53 = arith.constant dense<0.000000e+00> : vector<2x8xf32>
    %177 = vector.multi_reduction <add>, %176, %cst_53 [2] : vector<2x8x8xf32> to vector<2x8xf32>
    %178 = vector.shape_cast %177 : vector<2x8xf32> to vector<2x8x1xf32>
    %179 = tpu.reciprocal %178 {approx = true} : vector<2x8x1xf32> -> vector<2x8x1xf32>
    %180 = vector.broadcast %179 : vector<2x8x1xf32> to vector<2x8x8xf32>
    %181 = arith.mulf %176, %180 : vector<2x8x8xf32>
    %182 = arith.truncf %181 : vector<2x8x8xf32> to vector<2x8x8xbf16>
    "tpu.trace_start"() <{level = 10 : i32, message = "hqk,hkd->hqd"}> : () -> ()
    %cst_54 = arith.constant dense<0.000000e+00> : vector<2x8x16xf32>
    %183 = tpu.matmul %182, %165, %cst_54 {dimension_numbers = #tpu.dot_dimension_numbers<[2], [1], [1], [2], [0, 0, 0, 1, 1, 2], [0], [0]>} : vector<2x8x8xbf16>, vector<2x8x16xbf16>, vector<2x8x16xf32> -> vector<2x8x16xf32>
    "tpu.trace_stop"() : () -> ()
    %184 = arith.truncf %183 : vector<2x8x16xf32> to vector<2x8x16xbf16>
    %c1_55 = arith.constant 1 : index
    %c0_56 = arith.constant 0 : index
    %c0_57 = arith.constant 0 : index
    %c0_58 = arith.constant 0 : index
    %185 = vector.load %arg4[%c1_55, %c0_56, %c0_57, %c0_58] : memref<2x2x16x32xbf16, #tpu.memory_space<vmem>>, vector<1x2x16x32xbf16>
    %186 = vector.shape_cast %185 : vector<1x2x16x32xbf16> to vector<2x16x32xbf16>
    %cst_59 = arith.constant dense<0.000000e+00> : vector<2x8x32xf32>
    %187 = tpu.matmul %184, %186, %cst_59 {dimension_numbers = #tpu.dot_dimension_numbers<[2], [1], [1], [2], [0, 0, 0, 1, 1, 2], [0], [0]>} : vector<2x8x16xbf16>, vector<2x16x32xbf16>, vector<2x8x32xf32> -> vector<2x8x32xf32>
    %cst_60 = arith.constant dense<0.000000e+00> : vector<8x32xf32>
    %188 = vector.multi_reduction <add>, %187, %cst_60 [0] : vector<2x8x32xf32> to vector<8x32xf32>
    %189 = vector.broadcast %136 : vector<1x32xf32> to vector<8x32xf32>
    %190 = arith.addf %188, %189 : vector<8x32xf32>
    %191 = arith.addf %132, %190 : vector<8x32xf32>
    %cst_61 = arith.constant dense<0.000000e+00> : vector<8xf32>
    %192 = vector.multi_reduction <add>, %191, %cst_61 [1] : vector<8x32xf32> to vector<8xf32>
    %193 = vector.shape_cast %192 : vector<8xf32> to vector<8x1xf32>
    %cst_62 = arith.constant 3.200000e+01 : f32
    %194 = vector.broadcast %cst_62 : f32 to vector<8x1xf32>
    %195 = arith.divf %193, %194 : vector<8x1xf32>
    %196 = vector.broadcast %195 : vector<8x1xf32> to vector<8x32xf32>
    %197 = arith.subf %191, %196 : vector<8x32xf32>
    %198 = arith.mulf %197, %197 : vector<8x32xf32>
    %cst_63 = arith.constant dense<0.000000e+00> : vector<8xf32>
    %199 = vector.multi_reduction <add>, %198, %cst_63 [1] : vector<8x32xf32> to vector<8xf32>
    %200 = vector.shape_cast %199 : vector<8xf32> to vector<8x1xf32>
    %cst_64 = arith.constant 3.200000e+01 : f32
    %201 = vector.broadcast %cst_64 : f32 to vector<8x1xf32>
    %202 = arith.divf %200, %201 : vector<8x1xf32>
    %203 = vector.broadcast %195 : vector<8x1xf32> to vector<8x32xf32>
    %204 = arith.subf %191, %203 : vector<8x32xf32>
    %cst_65 = arith.constant 9.99999996E-13 : f32
    %205 = vector.broadcast %cst_65 : f32 to vector<8x1xf32>
    %206 = arith.addf %202, %205 : vector<8x1xf32>
    %207 = math.rsqrt %206 : vector<8x1xf32>
    %208 = vector.broadcast %207 : vector<8x1xf32> to vector<8x32xf32>
    %209 = arith.mulf %204, %208 : vector<8x32xf32>
    %210 = vector.broadcast %137 : vector<1x32xf32> to vector<8x32xf32>
    %211 = arith.mulf %209, %210 : vector<8x32xf32>
    %212 = vector.broadcast %138 : vector<1x32xf32> to vector<8x32xf32>
    %213 = arith.addf %211, %212 : vector<8x32xf32>
    %214 = arith.truncf %213 : vector<8x32xf32> to vector<8x32xbf16>
    %c1_66 = arith.constant 1 : index
    %c0_67 = arith.constant 0 : index
    %c0_68 = arith.constant 0 : index
    %215 = vector.load %arg5[%c1_66, %c0_67, %c0_68] : memref<2x32x64xbf16, #tpu.memory_space<vmem>>, vector<1x32x64xbf16>
    %216 = vector.shape_cast %215 : vector<1x32x64xbf16> to vector<32x64xbf16>
    %cst_69 = arith.constant dense<0.000000e+00> : vector<8x64xf32>
    %217 = tpu.matmul %214, %216, %cst_69 {dimension_numbers = #tpu.dot_dimension_numbers<[1], [0], [0], [1], [0, 0, 1, 1], [], []>} : vector<8x32xbf16>, vector<32x64xbf16>, vector<8x64xf32> -> vector<8x64xf32>
    %218 = vector.broadcast %139 : vector<1x64xf32> to vector<8x64xf32>
    %219 = arith.addf %217, %218 : vector<8x64xf32>
    %220 = arith.mulf %219, %219 : vector<8x64xf32>
    %221 = arith.mulf %219, %220 : vector<8x64xf32>
    %cst_70 = arith.constant 4.471500e-02 : f32
    %222 = vector.broadcast %cst_70 : f32 to vector<8x64xf32>
    %223 = arith.mulf %222, %221 : vector<8x64xf32>
    %224 = arith.addf %219, %223 : vector<8x64xf32>
    %cst_71 = arith.constant 0.797884583 : f32
    %225 = vector.broadcast %cst_71 : f32 to vector<8x64xf32>
    %226 = arith.mulf %225, %224 : vector<8x64xf32>
    %227 = math.tanh %226 : vector<8x64xf32>
    %cst_72 = arith.constant 1.000000e+00 : f32
    %228 = vector.broadcast %cst_72 : f32 to vector<8x64xf32>
    %229 = arith.addf %228, %227 : vector<8x64xf32>
    %cst_73 = arith.constant 5.000000e-01 : f32
    %230 = vector.broadcast %cst_73 : f32 to vector<8x64xf32>
    %231 = arith.mulf %230, %229 : vector<8x64xf32>
    %232 = arith.mulf %219, %231 : vector<8x64xf32>
    %233 = arith.truncf %232 : vector<8x64xf32> to vector<8x64xbf16>
    %c1_74 = arith.constant 1 : index
    %c0_75 = arith.constant 0 : index
    %c0_76 = arith.constant 0 : index
    %234 = vector.load %arg6[%c1_74, %c0_75, %c0_76] : memref<2x64x32xbf16, #tpu.memory_space<vmem>>, vector<1x64x32xbf16>
    %235 = vector.shape_cast %234 : vector<1x64x32xbf16> to vector<64x32xbf16>
    %cst_77 = arith.constant dense<0.000000e+00> : vector<8x32xf32>
    %236 = tpu.matmul %233, %235, %cst_77 {dimension_numbers = #tpu.dot_dimension_numbers<[1], [0], [0], [1], [0, 0, 1, 1], [], []>} : vector<8x64xbf16>, vector<64x32xbf16>, vector<8x32xf32> -> vector<8x32xf32>
    %237 = vector.broadcast %140 : vector<1x32xf32> to vector<8x32xf32>
    %238 = arith.addf %236, %237 : vector<8x32xf32>
    %239 = arith.addf %213, %238 : vector<8x32xf32>
    %cst_78 = arith.constant dense<0.000000e+00> : vector<8xf32>
    %240 = vector.multi_reduction <add>, %239, %cst_78 [1] : vector<8x32xf32> to vector<8xf32>
    %241 = vector.shape_cast %240 : vector<8xf32> to vector<8x1xf32>
    %cst_79 = arith.constant 3.200000e+01 : f32
    %242 = vector.broadcast %cst_79 : f32 to vector<8x1xf32>
    %243 = arith.divf %241, %242 : vector<8x1xf32>
    %244 = vector.broadcast %243 : vector<8x1xf32> to vector<8x32xf32>
    %245 = arith.subf %239, %244 : vector<8x32xf32>
    %246 = arith.mulf %245, %245 : vector<8x32xf32>
    %cst_80 = arith.constant dense<0.000000e+00> : vector<8xf32>
    %247 = vector.multi_reduction <add>, %246, %cst_80 [1] : vector<8x32xf32> to vector<8xf32>
    %248 = vector.shape_cast %247 : vector<8xf32> to vector<8x1xf32>
    %cst_81 = arith.constant 3.200000e+01 : f32
    %249 = vector.broadcast %cst_81 : f32 to vector<8x1xf32>
    %250 = arith.divf %248, %249 : vector<8x1xf32>
    %251 = vector.broadcast %243 : vector<8x1xf32> to vector<8x32xf32>
    %252 = arith.subf %239, %251 : vector<8x32xf32>
    %cst_82 = arith.constant 9.99999996E-13 : f32
    %253 = vector.broadcast %cst_82 : f32 to vector<8x1xf32>
    %254 = arith.addf %250, %253 : vector<8x1xf32>
    %255 = math.rsqrt %254 : vector<8x1xf32>
    %256 = vector.broadcast %255 : vector<8x1xf32> to vector<8x32xf32>
    %257 = arith.mulf %252, %256 : vector<8x32xf32>
    %258 = vector.broadcast %141 : vector<1x32xf32> to vector<8x32xf32>
    %259 = arith.mulf %257, %258 : vector<8x32xf32>
    %260 = vector.broadcast %142 : vector<1x32xf32> to vector<8x32xf32>
    %261 = arith.addf %259, %260 : vector<8x32xf32>
    %262 = arith.truncf %261 : vector<8x32xf32> to vector<8x32xbf16>
    %c0_83 = arith.constant 0 : index
    %c0_84 = arith.constant 0 : index
    %263 = vector.load %arg8[%c0_83, %c0_84] : memref<32x128xbf16, #tpu.memory_space<vmem>>, vector<32x128xbf16>
    %cst_85 = arith.constant dense<0.000000e+00> : vector<8x128xf32>
    %264 = tpu.matmul %262, %263, %cst_85 {dimension_numbers = #tpu.dot_dimension_numbers<[1], [0], [0], [1], [0, 0, 1, 1], [], []>} : vector<8x32xbf16>, vector<32x128xbf16>, vector<8x128xf32> -> vector<8x128xf32>
    %c0_86 = arith.constant 0 : index
    %c0_87 = arith.constant 0 : index
    %265 = vector.load %arg9[%c0_86, %c0_87] : memref<1x128xf32, #tpu.memory_space<vmem>>, vector<1x128xf32>
    %266 = vector.broadcast %265 : vector<1x128xf32> to vector<8x128xf32>
    %267 = arith.addf %264, %266 : vector<8x128xf32>
    %c0_88 = arith.constant 0 : index
    %c0_89 = arith.constant 0 : index
    %c0_90 = arith.constant 0 : index
    %268 = vector.load %arg10[%c0_88, %c0_89, %c0_90] : memref<1x8x128xf32, #tpu.memory_space<vmem>>, vector<1x8x128xf32>
    %269 = vector.shape_cast %268 : vector<1x8x128xf32> to vector<8x128xf32>
    %270 = vector.shape_cast %267 : vector<8x128xf32> to vector<1x8x128xf32>
    tpu.vector_store %arg10[%c0_88, %c0_89, %c0_90], %270 {strides = array<i32>} : memref<1x8x128xf32, #tpu.memory_space<vmem>>, vector<1x8x128xf32>,
    return
  }
  func.func @transform_0(%arg0: i32) -> (i32, i32, i32) {
    %c0_i32 = arith.constant 0 : i32
    %c0_i32_0 = arith.constant 0 : i32
    %c0_i32_1 = arith.constant 0 : i32
    return %arg0, %c0_i32, %c0_i32_0 : i32, i32, i32
  }
  func.func @transform_1(%arg0: i32) -> (i32, i32, i32) {
    %c0_i32 = arith.constant 0 : i32
    %c0_i32_0 = arith.constant 0 : i32
    %c0_i32_1 = arith.constant 0 : i32
    return %arg0, %c0_i32, %c0_i32_0 : i32, i32, i32
  }
  func.func @transform_2(%arg0: i32) -> (i32, i32, i32) {
    %c0_i32 = arith.constant 0 : i32
    %c0_i32_0 = arith.constant 0 : i32
    %c0_i32_1 = arith.constant 0 : i32
    %c0_i32_2 = arith.constant 0 : i32
    return %c0_i32, %c0_i32_0, %c0_i32_1 : i32, i32, i32
  }
  func.func @transform_3(%arg0: i32) -> (i32, i32, i32, i32) {
    %c0_i32 = arith.constant 0 : i32
    %c0_i32_0 = arith.constant 0 : i32
    %c0_i32_1 = arith.constant 0 : i32
    %c0_i32_2 = arith.constant 0 : i32
    %c0_i32_3 = arith.constant 0 : i32
    return %c0_i32, %c0_i32_0, %c0_i32_1, %c0_i32_2 : i32, i32, i32, i32
  }
  func.func @transform_4(%arg0: i32) -> (i32, i32, i32) {
    %c0_i32 = arith.constant 0 : i32
    %c0_i32_0 = arith.constant 0 : i32
    %c0_i32_1 = arith.constant 0 : i32
    %c0_i32_2 = arith.constant 0 : i32
    return %c0_i32, %c0_i32_0, %c0_i32_1 : i32, i32, i32
  }
  func.func @transform_5(%arg0: i32) -> (i32, i32, i32) {
    %c0_i32 = arith.constant 0 : i32
    %c0_i32_0 = arith.constant 0 : i32
    %c0_i32_1 = arith.constant 0 : i32
    %c0_i32_2 = arith.constant 0 : i32
    return %c0_i32, %c0_i32_0, %c0_i32_1 : i32, i32, i32
  }
  func.func @transform_6(%arg0: i32) -> (i32, i32, i32) {
    %c0_i32 = arith.constant 0 : i32
    %c0_i32_0 = arith.constant 0 : i32
    %c0_i32_1 = arith.constant 0 : i32
    %c0_i32_2 = arith.constant 0 : i32
    return %c0_i32, %c0_i32_0, %c0_i32_1 : i32, i32, i32
  }
  func.func @transform_7(%arg0: i32) -> (i32, i32) {
    %c0_i32 = arith.constant 0 : i32
    %c0_i32_0 = arith.constant 0 : i32
    %c0_i32_1 = arith.constant 0 : i32
    return %c0_i32, %c0_i32_0 : i32, i32
  }
  func.func @transform_8(%arg0: i32) -> (i32, i32) {
    %c0_i32 = arith.constant 0 : i32
    %c0_i32_0 = arith.constant 0 : i32
    %c0_i32_1 = arith.constant 0 : i32
    return %c0_i32, %c0_i32_0 : i32, i32
  }
  func.func @transform_9(%arg0: i32) -> (i32, i32, i32) {
    %c0_i32 = arith.constant 0 : i32
    %c0_i32_0 = arith.constant 0 : i32
    %c0_i32_1 = arith.constant 0 : i32
    return %arg0, %c0_i32, %c0_i32_0 : i32, i32, i32
  }
}

</mosaic_0001>

<bundles_post_ra>
// kernel: tpu_custom_call.1
= control target key start
LH: loop header
LB: loop body
LE: loop exit
PB: predicated region body
PF: predicated region fallthrough
CT: control target
= control target key end

     0   :  { %s2993_s0 = inlined_call_operand.hbm [shape: f32[2,8,32], index: 0, kind: input, shape index: {}]   ;;  %s2994_s1 = inlined_call_operand.hbm [shape: f32[2,1,8], index: 1, kind: input, shape index: {}]   ;;  %s2995_s2 = inlined_call_operand.vmem [shape: bf16[2,32,96], index: 2, kind: input, shape index: {}]   ;;  %s2996_s3 = inlined_call_operand.vmem [shape: bf16[2,2,16,32], index: 3, kind: input, shape index: {}]   ;;  %s2997_s4 = inlined_call_operand.vmem [shape: bf16[2,32,64], index: 4, kind: input, shape index: {}]   ;;  %s2998_s5 = inlined_call_operand.vmem [shape: bf16[2,64,32], index: 5, kind: input, shape index: {}]   ;;  %s2999_s6 = inlined_call_operand.hbm [shape: f32[2,8,128], index: 6, kind: input, shape index: {}]   ;;  %s3000_s7 = inlined_call_operand.hbm [shape: bf16[32,128], index: 7, kind: input, shape index: {}]   ;;  %s3001_s8 = inlined_call_operand.vmem [shape: f32[1,128], index: 8, kind: input, shape index: {}]   ;;  %s3002_s9 = inlined_call_operand.hbm [shape: f32[2,8,128], index: 9, kind: output, shape index: {}]  }
   0x1   :  { %3010 = sst [smem:[#allocation19_spill]] %s2993_s0 }
   0x2   :  { %3011 = sst [smem:[#allocation20_spill]] %s2999_s6 }
   0x3   :  { %3012 = sst [smem:[#allocation21_spill]] %s3000_s7 }
   0x4   :  { %14 = vsyncpa [#allocation3], 0 }
   0x5   :  { %16 = vsyncpa [#allocation3 + $0x1], 0 }
   0x6   :  { %17 = vsyncpa [#allocation6], 0 }
   0x7   :  { %19 = vsyncpa [#allocation6 + $0x1], 0 }
   0x8   :  { %20 = vsyncpa [#allocation9], 0 }
   0x9   :  { %21 = vsyncpa [#allocation4], 0 }
   0xa   :  { %23 = vsyncpa [#allocation4 + $0x1], 0  ;;  %s2496_s30 = smov 0   ;;  %s2498_s10 = smov 0  }
   0xb   :  { %s2500_s11 = smov 0   ;;  %s2502_s12 = smov 0  }
   0xc LB: > { %3013 = sst [smem:[#allocation16_spill]] %s2424_s11  ;;  %s2517_s13 = sadd.s32 4294967295, %s2428_s12   ;;  %s2428_s12 = sphi %s2502_s12, %s3036_s12   ;;  %s2424_s11 = sphi %s2500_s11, %s3038_s11   ;;  %s2420_s10 = sphi %s2498_s10, %s3040_s10   ;;  %s2416_s30 = sphi %s2496_s30, %s3039_s30  }
   0xd   : > { %s1846_s14 = sadd.s32 4294967294, %s2428_s12   ;;  %p49_p0 = scmp.ne.s32.totalorder %s2420_s10, %s2416_s30 }
   0xe   : > { %p3003_p1 = scmp.eq.s32.totalorder %s2517_s13, 0  ;;  %p252_p3 = scmp.eq.s32.totalorder %s1846_s14, 1 }
   0xf   : > { %p1847_p5 = scmp.ge.s32.totalorder %s2428_s12, 1  ;;  %p259_p7 = scmp.lt.s32.totalorder %s2428_s12, 3 }
  0x10   : > { %p2526_p4 = por %p3003_p1, %p49_p0  ;;  %p2531_p6 = por %p252_p3, %p49_p0 }
  0x11   : > { %p2536_p8 = pnand %p1847_p5, %p259_p7  ;;  %s2430_s18 = smov [#allocation7]  }
  0x12   : > { %s3014_s15 = scalar_select %p2526_p4, 1, 0 }
  0x13   : > { %s3015_s16 = scalar_select %p2531_p6, 1, 0 }
  0x14   : > { %s3016_s17 = scalar_select %p2536_p8, 1, 0 }
  0x15   : > { %s283_s19 = sshll.u32 %s2430_s18, 4  ;;  %p2125_p9 = pneg %p2536_p8  ;;  %s284_s19 = int_to_ptr.vmem [resolvable:$true] %s283_s19 }
  0x16   : > { %s2431_s21 = smov [#allocation8]   ;;  %s2255_s23 = scalar_lea.vmem %s284_s19, 256 }
  0x17   : > { %p2545_p11 = pnand %p2125_p9, %p3003_p1  ;;  %s296_s22 = sshll.u32 %s2431_s21, 4  ;;  %s297_s22 = int_to_ptr.vmem [resolvable:$true] %s296_s22 }
  0x18   : > { %p2256_p13 = scmp.ne.s32.totalorder %s284_s19, %s2255_s23  ;;  %p2263_p5 = scmp.lt.s32.totalorder %s284_s19, %s284_s19 }
  0x19   : > { %p2246_p12 = pneg %p2545_p11  ;;  %p2264_p7 = scmp.lt.s32.totalorder %s2255_s23, %s2255_s23 }
  0x1b   : > { %p2258_p0 = pnand %p2256_p13, %p2246_p12  ;;  %p2265_p10 = por %p2264_p7, %p2263_p5 }
  0x1d   : > { %p2259_p3 = pneg %p2258_p0 }
  0x1f   : > { %p2266_p9 = pnand %p2265_p10, %p2259_p3 }
  0x21   : > { %2269 = shalt.err (!%p2266_p9)
}
  0x22   : > { %s2432_s24 = smov 128   ;;  %s2433_s25 = smov 8  }
  0x23   : > { %s3018_s6 = sld [smem:[#allocation20_spill]]  ;;  %s2281_s28 = scalar_lea.vmem %s297_s22, 256 }
  0x24   : > { %p2282_p1 = scmp.ne.s32.totalorder %s297_s22, %s2281_s28  ;;  %p2289_p2 = scmp.lt.s32.totalorder %s297_s22, %s297_s22 }
  0x25   : > { %p2290_p6 = scmp.lt.s32.totalorder %s2281_s28, %s2281_s28 }
  0x26   : > { %p2284_p13 = pnand %p2282_p1, %p2246_p12 }
  0x27   : > { %p2291_p5 = por %p2290_p6, %p2289_p2 }
  0x28   : > { %p2285_p0 = pneg %p2284_p13 }
  0x29   : > { %2128 = dma.hbm_to_vmem [thread:$0]  (!%p2545_p11), %s3018_s6, 256, %s284_s19, [#allocation6], %s2432_s24, %s2432_s24, %s2433_s25  }
  0x2a   : > { %p2292_p10 = pnand %p2291_p5, %p2285_p0 }
  0x2c   : > { %2295 = shalt.err (!%p2292_p10)
}
  0x2d   : > { %s2434_s29 = smov 64   ;;  %s2435_s14 = smov 4  }
  0x2e   : > { %s3019_s7 = sld [smem:[#allocation21_spill]]  ;;  %s2568_s21 = sadd.s32 1, %s2428_s12  }
  0x2f   : > { %3020 = sst [smem:[#allocation17_spill]] %s2568_s21  ;;  %s33_s23 = ssub.s32 %s2428_s12, %s2568_s21 }
  0x30   : > { %p34_p1 = scmp.eq.s32.totalorder %s33_s23, 0  ;;  %s36_s24 = sadd.s32 1, %s2424_s11 }
  0x31   : > { %p43_p2 = scmp.ne.s32.totalorder %s2424_s11, %s2420_s10  ;;  %p44_p6 = scmp.eq.s32.totalorder %s2428_s12, 0 }
  0x32   : > { %s2577_s25 = scalar_select %p34_p1, %s2424_s11, %s36_s24  }
  0x33   : > { %p45_p12 = por %p44_p6, %p43_p2  ;;  %p3022_p3 = scmp.eq.s32.totalorder %s2517_s13, 1 }
  0x34   : > { %2131 = dma.hbm_to_vmem [thread:$0]  (!%p2545_p11), %s3019_s7, 256, %s297_s22, [#allocation9], %s2434_s29, %s2434_s29, %s2435_s14  }
  0x35   : > { %3021 = sst [smem:[#allocation18_spill]] %s2577_s25  ;;  %p2581_p7 = por %p3022_p3, %p43_p2 }
  0x36   : > { %p2145_p9 = scmp.lt.s32.totalorder %s2428_s12, 2  ;;  %s2587_s20 = sand.u32 1, %s2424_s11  }
  0x37   : > { %s3023_s26 = scalar_select %p2581_p7, 1, 0 }
  0x38   : > { %s1851_s22 = sshll.u32 %s2587_s20, 3  ;;  %s1852_s27 = sshll.u32 %s2428_s12, 7 }
  0x39   : > { %s3024_s0 = sld [smem:[#allocation19_spill]]  ;;  %s317_s18 = scalar_lea.vmem [#allocation2], %s1851_s22 }
  0x3a   : > { %s324_s19 = sshll.u32 %s317_s18, 4  ;;  %p2598_p11 = pnand %p2145_p9, %p45_p12  ;;  %s2596_s19 = int_to_ptr.vmem [resolvable:$true] %s324_s19 }
  0x3b   : > { %s314_s6 = scalar_lea.sflag [#allocation3], %s2587_s20 }
  0x3c   : > { %p2298_p0 = pneg %p2598_p11 }
  0x3f   : > { %s2594_s14 = scalar_lea.hbm %s3024_s0, %s1852_s27  ;;  %s2301_s28 = scalar_lea.hbm %s3024_s0, 256 }
  0x40   : > { %s2296_s7 = scalar_lea.hbm %s2594_s14, 128  ;;  %p2302_p1 = scmp.lt.s32.totalorder %s2594_s14, %s3024_s0 }
  0x41   : > { %p2297_p13 = scmp.ne.s32.totalorder %s2594_s14, %s2296_s7  ;;  %p2303_p2 = scmp.lt.s32.totalorder %s2301_s28, %s2296_s7 }
  0x43   : > { %p2299_p5 = pnand %p2298_p0, %p2297_p13  ;;  %p2304_p6 = por %p2303_p2, %p2302_p1 }
  0x45   : > { %p2300_p10 = pneg %p2299_p5 }
  0x47   : > { %p2305_p12 = pnand %p2304_p6, %p2300_p10 }
  0x49   : > { %2308 = shalt.err (!%p2305_p12)
}
  0x4a   : > { %s2309_s24 = scalar_lea.vmem %s2596_s19, 128  ;;  %s2436_s22 = smov [#allocation2]  }
  0x4b   : > { %p2310_p3 = scmp.ne.s32.totalorder %s2596_s19, %s2309_s24  ;;  %s2314_s27 = sshll.u32 %s2436_s22, 4  ;;  %s2315_s27 = int_to_ptr.vmem [resolvable:$false] %s2314_s27 }
  0x4c   : > { %s2316_s25 = scalar_lea.vmem %s2315_s27, 256  ;;  %p2317_p5 = scmp.lt.s32.totalorder %s2596_s19, %s2315_s27 }
  0x4d   : > { %p2312_p9 = pnand %p2310_p3, %p2298_p0  ;;  %p2318_p7 = scmp.lt.s32.totalorder %s2316_s25, %s2309_s24 }
  0x4f   : > { %p2313_p13 = pneg %p2312_p9  ;;  %p2319_p4 = por %p2318_p7, %p2317_p5 }
  0x51   : > { %p2320_p1 = pnand %p2319_p4, %p2313_p13 }
  0x53   : > { %2323 = shalt.err (!%p2320_p1)
}
  0x54   : > { %2135 = dma.hbm_to_vmem [thread:$0]  (!%p2598_p11), %s2594_s14, 128, %s2596_s19, %s314_s6  }
  0x55   : > { %s1853_s7 = sshll.u32 %s2428_s12, 4  ;;  %s334_s28 = scalar_lea.vmem [#allocation5], %s2587_s20 }
  0x56   : > { %s341_s29 = sshll.u32 %s334_s28, 4  ;;  %s339_s27 = scalar_lea.hbm %s2994_s1, %s1853_s7  ;;  %s342_s29 = int_to_ptr.vmem [resolvable:$true] %s341_s29 }
  0x57   : > { %s3026_s25 = sand.u32 1, %s2428_s12   ;;  %s2324_s0 = scalar_lea.hbm %s339_s27, 16 }
  0x58   : > { %s332_s24 = scalar_lea.sflag [#allocation6], %s3026_s25  ;;  %p2325_p4 = scmp.ne.s32.totalorder %s339_s27, %s2324_s0 }
  0x59   : > { %s2329_s6 = scalar_lea.hbm %s2994_s1, 32  ;;  %p2330_p2 = scmp.lt.s32.totalorder %s339_s27, %s2994_s1 }
  0x5a   : > { %p2327_p7 = pnand %p2325_p4, %p2298_p0  ;;  %p2331_p6 = scmp.lt.s32.totalorder %s2329_s6, %s2324_s0 }
  0x5c   : > { %p2328_p10 = pneg %p2327_p7  ;;  %p2332_p12 = por %p2331_p6, %p2330_p2 }
  0x5e   : > { %p2333_p3 = pnand %p2332_p12, %p2328_p10 }
  0x60   : > { %2336 = shalt.err (!%p2333_p3)
}
  0x61   : > { %s2337_s19 = scalar_lea.vmem %s342_s29, 16  ;;  %s2437_s7 = smov [#allocation5]  }
  0x62   : > { %p2338_p9 = scmp.ne.s32.totalorder %s342_s29, %s2337_s19  ;;  %s2342_s28 = sshll.u32 %s2437_s7, 4  ;;  %s2343_s28 = int_to_ptr.vmem [resolvable:$false] %s2342_s28 }
  0x63   : > { %s2344_s11 = scalar_lea.vmem %s2343_s28, 32  ;;  %p2345_p1 = scmp.lt.s32.totalorder %s342_s29, %s2343_s28 }
  0x64   : > { %p2340_p13 = pnand %p2338_p9, %p2298_p0  ;;  %p2346_p4 = scmp.lt.s32.totalorder %s2344_s11, %s2337_s19 }
  0x66   : > { %p2341_p5 = pneg %p2340_p13  ;;  %p2347_p7 = por %p2346_p4, %p2345_p1 }
  0x68   : > { %p2348_p8 = pnand %p2347_p7, %p2341_p5 }
  0x6a   : > { %2351 = shalt.err (!%p2348_p8)
}
  0x6b   : > { %2138 = dma.hbm_to_vmem [thread:$0]  (!%p2598_p11), %s339_s27, 16, %s342_s29, %s332_s24  }
  0x6c   : > { %p3027_p10 = scmp.ne.s32.totalorder %s3016_s17, 0 }
  0x6d   : > { %s2652_s0 = sand.u32 (!%p3027_p10), 1, %s2420_s10   ;;  %p3028_p0 = scmp.ne.s32.totalorder (!%p3027_p10), %s3014_s15, 0 }
  0x6e   : > { %350 = sbr.rel (%p3027_p10) target bundleno = 4892 (0x131c), region = 56  ;;  %s1855_s21 = sshll.u32 (!%p3027_p10), %s2652_s0, 3 }
  0x6f   : > { %s353_s18 = scalar_lea.sflag (!%p3027_p10), [#allocation3], %s2652_s0  ;;  %s356_s22 = scalar_lea.vmem (!%p3027_p10), [#allocation2], %s1855_s21 }
  0x73   : > { %2395 = dma.done.wait (%p3028_p0), %s353_s18, 128  }
  0x74   : > { %2397 = vsyncadd (%p3028_p0), %s353_s18, 4294967168  ;;  %s361_s17 = sand.u32 1, %s2517_s13   ;;  %s364_s29 = scalar_lea.vmem [#allocation5], %s2652_s0 }
  0x75   : > { %s362_s23 = scalar_lea.sflag [#allocation6], %s361_s17 }
  0x76   : > { %2399 = dma.done.wait (%p3028_p0), %s362_s23, 16  }
  0x77   : > { %2401 = vsyncadd (%p3028_p0), %s362_s23, 4294967280  ;;  %p3029_p8 = scmp.eq.s32.totalorder %s2517_s13, 0 }
  0x79   : > { %2403 = dma.done.wait (%p3029_p8), [#allocation6], 256   ;;  %p3030_p11 = pmov %p3029_p8 }
  0x7a   : > { %p3031_p2 = pmov %p3029_p8 }
  0x7b   : > { %2405 = vsyncadd (%p3030_p11), [#allocation6], 4294967040 }
  0x7c   : > { %2407 = dma.done.wait (%p3031_p2), [#allocation9], 256   ;;  %p3032_p6 = pmov %p3031_p2 }
  0x7d   : > { %v2438_v0 = vmov 0.0   ;;  %vm2439_vm0 = vmmov 0   ;;  %v2194_v1 = vld [vmem:[%s2995_s2 + $0x8] sm:$0xff]   ;;  %v2195_v2 = vld [vmem:[%s2995_s2] sm:$0xff]   ;;  %vm436_vm1 = vcmask 261120   ;;  %v420_v5 = vlaneseq  ;;  %v2700_v8 = vld [vmem:[#allocation7] sm:$0xff] }
  0x7e   : > { %2409 = vsyncadd (%p3032_p6), [#allocation9], 4294967040  ;;  %1975 = vmatprep.subr.bf16.mxu0 %v2438_v0  ;;  %1979 = vmatprep.mubr.msk.bf16.mxu0 %vm2439_vm0, %v2438_v0  ;;  %v2688_v3 = vld [vmem:[%s356_s22] sm:$0xff]  ;;  %s2440_s6 = smov 112   ;;  %s2441_s14 = smov 96   ;;  %vm502_vm2 = vcmask 130048  }
  0x7f   : > { %1983 = vmatprep.subr.bf16.mxu1 %v2438_v0  ;;  %1985 = vmatprep.mubr.msk.bf16.mxu1 %vm2439_vm0, %v2438_v0  ;;  %v415_v4 = vpack.c.bf16 %v2688_v3, %v2688_v3  ;;  %v2697_v6 = vshrl.u32 %v420_v5, 7  ;;  %s2442_s20 = smov 80   ;;  %v2720_v25 = vld [vmem:[%s364_s29] ss:$0 sm:$0xff]  ;;  %vm605_vm3 = vcmask 64512   ;;  %s2443_s19 = smov 48  }
  0x80   : > { %1976 = vmatpush3.bf16.msra.mxu0 %v2194_v1  ;;  %s2444_s7 = smov 64   ;;  %vm633_vm4 = vcmask 1043456   ;;  %v2196_v63 = vld [vmem:[%s2996_s3] sm:$0xff]   ;;  %v2197_v1 = vld [vmem:[%s2996_s3 + $0x8] sm:$0xff]   ;;  %vm970_vm5 = vcmask 523264   ;;  %s1724_s11 = scalar_lea.sflag [#allocation4], %s2652_s0 }
  0x81   : > { %1977 = vmatprep.subr.bf16.mxu0 %v2438_v0  ;;  %v422_v7 = vsub.s32 0, %v2697_v6  ;;  %p3033_p3 = scmp.ne.s32.totalorder %s3023_s26, 0 }
  0x83   : > { %v423_v9 = vrot.slane %v2700_v8, %v422_v7 }
  0x84   : > { %1978 = vmatpush3.bf16.msra.mxu0 %v2195_v2 }
  0x85   : > { %1989 = vmatprep.subr.bf16.mxu0 %v2438_v0 }
  0x87   : > { %1980 = vmatmul.mubr.msk.bf16.vlgmr.msra.gmra.mxu0 %vm436_vm1, %v415_v4 }
  0x88   : > { %1991 = vmatprep.mubr.msk.bf16.mxu0 %vm2439_vm0, %v2438_v0 }
 0x147   : > { %v474_v10 = vpop.f32.mrf.mxu0 }
 0x148   : > { %v475_v11 = vadd.f32 %v474_v10, %v423_v9 }
 0x149   : > { %v1981_v12 = vpop.f32.mrf.mxu0 }
 0x14a   : > { %481 = vrot.lane.b32.xlu1 %v475_v11, %s2440_s6  ;;  %484 = vrot.lane.b32.xlu0 %v475_v11, %s2441_s14  ;;  %v496_v21 = vpack.c.bf16 %v475_v11, %v475_v11 }
 0x14b   : > { %v477_v13 = vpop.f32.mrf.mxu0 }
 0x14d   : > { %v1982_v14 = vpop.f32.mrf.mxu0 }
 0x14e   : > { %487 = vrot.lane.b32.xlu0 %v475_v11, %s2442_s20 }
 0x1bc   : > { %v485_v15 = vpop.permute.xlu0 %484  ;;  %v482_v22 = vpop.permute.xlu1 %481 }
 0x1bd   : > { %v498_v16 = vpack.c.bf16 %v485_v15, %v485_v15  ;;  %v497_v23 = vpack.c.bf16 %v482_v22, %v482_v22 }
 0x1bf   : > { %v507_v17 = vsel %vm502_vm2, %v498_v16, 0 }
 0x1c0   : > { %1984 = vmatpush3.bf16.xpose.msra.mxu1 %v507_v17  ;;  %v488_v18 = vpop.permute.xlu0 %487  ;;  %v832_v17 = vsub.s32 1, %v2697_v6 }
 0x1c1   : > { %v499_v19 = vpack.c.bf16 %v488_v18, %v488_v18  ;;  %1995 = vmatprep.subr.bf16.mxu1 %v2438_v0 }
 0x1c3   : > { %v553_v20 = vsel %vm502_vm2, %v499_v19, 0 }
 0x1c4   : > { %1990 = vmatpush3.bf16.xpose.msra.mxu0 %v553_v20 }
 0x1c5   : > { %2001 = vmatprep.subr.bf16.mxu0 %v2438_v0 }
 0x1c7   : > { %1986 = vmatmul.mubr.msk.bf16.vlgmr.msra.gmra.mxu1 %vm502_vm2, %v496_v21  ;;  %v833_v21 = vrot.slane %v2700_v8, %v832_v17 }
 0x1c8   : > { %1997 = vmatprep.mubr.msk.bf16.mxu1 %vm2439_vm0, %v2438_v0 }
 0x1cb   : > { %1992 = vmatmul.mubr.msk.bf16.vlgmr.msra.gmra.mxu0 %vm502_vm2, %v497_v23 }
 0x1cc   : > { %2003 = vmatprep.mubr.msk.bf16.mxu0 %vm2439_vm0, %v2438_v0 }
 0x287   : > { %v543_v24 = vpop.f32.mrf.mxu1 }
 0x288   : > { %v595_v26 = vmul.f32 0.25, %v543_v24 }
 0x289   : > { %v1987_v27 = vpop.f32.mrf.mxu1 }
 0x28a   : > { %v603_v28 = vadd.f32 %v2720_v25, %v595_v26 }
 0x28b   : > { %v546_v29 = vpop.f32.mrf.mxu1  ;;  %v589_v30 = vpop.f32.mrf.mxu0 }
 0x28c   : > { %v596_v31 = vmul.f32 0.25, %v589_v30  ;;  %v606_v32 = vsel %vm605_vm3, %v603_v28, -inf }
 0x28d   : > { %607 = vmax.xlane.f32.xlu1 %v606_v32  ;;  %v1988_v33 = vpop.f32.mrf.mxu1  ;;  %v1993_v34 = vpop.f32.mrf.mxu0 }
 0x28e   : > { %v604_v35 = vadd.f32 %v2720_v25, %v596_v31 }
 0x28f   : > { %v592_v36 = vpop.f32.mrf.mxu0 }
 0x290   : > { %v609_v37 = vsel %vm605_vm3, %v604_v35, -inf }
 0x291   : > { %610 = vmax.xlane.f32.xlu0 %v609_v37  ;;  %v1994_v38 = vpop.f32.mrf.mxu0 }
 0x292   : > { %v2198_v38 = vld [vmem:[%s2997_s4 + $0x8] sm:$0xff]  }
 0x316   : > { %v608_v39 = vpop.xlane.xlu1 %607 }
 0x317   : > { %v612_v40 = vsub.f32 %v603_v28, %v608_v39  ;;  %v2199_v39 = vld [vmem:[%s2997_s4] sm:$0xff]  }
 0x319   : > { %v614_v41 = vmul.f32 1.442695, %v612_v40 }
 0x31a   : > { %v611_v42 = vpop.xlane.xlu0 %610 }
 0x31b   : > { %2216 = vpow2.f32 %v614_v41  ;;  %v613_v43 = vsub.f32 %v604_v35, %v611_v42  ;;  %v852_v42 = vsub.s32 2, %v2697_v6 }
 0x31d   : > { %v616_v44 = vmul.f32 1.442695, %v613_v43  ;;  %v857_v43 = vsub.s32 3, %v2697_v6 }
 0x31f   : > { %2218 = vpow2.f32 %v616_v44  ;;  %v853_v44 = vrot.slane %v2700_v8, %v852_v42 }
 0x328   : > { %v2217_v45 = vpop.eup %2216 }
 0x329   : > { %v618_v46 = vsel %vm605_vm3, %v2217_v45, 0.0 }
 0x32a   : > { %619 = vadd.xlane.f32.xlu0 %v618_v46 }
 0x32c   : > { %v2219_v47 = vpop.eup %2218 }
 0x32d   : > { %v621_v48 = vsel %vm605_vm3, %v2219_v47, 0.0 }
 0x32e   : > { %622 = vadd.xlane.f32.xlu1 %v621_v48 }
 0x33f   : > { %493 = vrot.lane.b32.xlu1 %v475_v11, %s2443_s19 }
 0x340   : > { %490 = vrot.lane.b32.xlu0 %v475_v11, %s2444_s7 }
 0x3b3   : > { %v620_v49 = vpop.xlane.xlu0 %619 }
 0x3b4   : > { %2220 = vrcp.f32 %v620_v49 }
 0x3b7   : > { %v623_v50 = vpop.xlane.xlu1 %622  ;;  %v491_v51 = vpop.permute.xlu0 %490 }
 0x3b8   : > { %2222 = vrcp.f32 %v623_v50  ;;  %v500_v52 = vpack.c.bf16 %v491_v51, %v491_v51  ;;  %v2200_v51 = vld [vmem:[%s2998_s5 + $0x18] sm:$0xff]  }
 0x3ba   : > { %v635_v53 = vsel %vm633_vm4, %v500_v52, 0  ;;  %v2201_v52 = vld [vmem:[%s2998_s5 + $0x10] sm:$0xff]  }
 0x3bb   : > { %v494_v54 = vpop.permute.xlu1 %493  ;;  %1996 = vmatpush3.bf16.msra.mxu1 %v635_v53  ;;  %v2202_v53 = vld [vmem:[%s2998_s5 + $0x8] sm:$0xff]  }
 0x3bc   : > { %v501_v55 = vpack.c.bf16 %v494_v54, %v494_v54  ;;  %2007 = vmatprep.subr.bf16.mxu1 %v2438_v0  ;;  %v2203_v54 = vld [vmem:[%s2998_s5] sm:$0xff]  }
 0x3be   : > { %v681_v56 = vsel %vm633_vm4, %v501_v55, 0  ;;  %v867_v55 = vsub.s32 4, %v2697_v6 }
 0x3bf   : > { %2002 = vmatpush3.bf16.msra.mxu0 %v681_v56 }
 0x3c0   : > { %2013 = vmatprep.subr.bf16.mxu0 %v2438_v0  ;;  %v868_v56 = vrot.slane %v2700_v8, %v867_v55 }
 0x3c1   : > { %v2221_v57 = vpop.eup %2220 }
 0x3c2   : > { %v626_v58 = vmul.f32 %v2221_v57, %v2217_v45 }
 0x3c4   : > { %v628_v59 = vpack.c.bf16 %v626_v58, %v626_v58 }
 0x3c5   : > { %v2223_v60 = vpop.eup %2222 }
 0x3c6   : > { %1998 = vmatmul.mubr.msk.bf16.vlgmr.msra.gmra.mxu1 %vm605_vm3, %v628_v59  ;;  %v627_v61 = vmul.f32 %v2223_v60, %v2219_v47  ;;  %v858_v47 = vrot.slane %v2700_v8, %v857_v43 }
 0x3c7   : > { %2009 = vmatprep.mubr.msk.bf16.mxu1 %vm2439_vm0, %v2438_v0  ;;  %2008 = vmatpush3.bf16.msra.mxu1 %v2196_v63 }
 0x3c8   : > { %v629_v62 = vpack.c.bf16 %v627_v61, %v627_v61  ;;  %2019 = vmatprep.subr.bf16.mxu1 %v2438_v0 }
 0x3ca   : > { %2004 = vmatmul.mubr.msk.bf16.vlgmr.msra.gmra.mxu0 %vm605_vm3, %v629_v62 }
 0x3cb   : > { %2015 = vmatprep.mubr.msk.bf16.mxu0 %vm2439_vm0, %v2438_v0  ;;  %2014 = vmatpush3.bf16.msra.mxu0 %v2197_v1 }
 0x3cc   : > { %2027 = vmatprep.subr.bf16.mxu0 %v2438_v0 }
 0x486   : > { %v671_v2 = vpop.f32.mrf.mxu1 }
 0x487   : > { %v723_v4 = vpack.c.bf16 %v671_v2, %v671_v2 }
 0x488   : > { %v1999_v5 = vpop.f32.mrf.mxu1 }
 0x489   : > { %2010 = vmatmul.mubr.msk.bf16.vlgmr.msra.gmra.mxu1 %vm502_vm2, %v723_v4 }
 0x48a   : > { %v674_v9 = vpop.f32.mrf.mxu1  ;;  %v717_v10 = vpop.f32.mrf.mxu0  ;;  %2023 = vmatprep.mubr.msk.bf16.mxu1 %vm2439_vm0, %v2438_v0  ;;  %2020 = vmatpush3.bf16.msra.mxu1 %v2198_v38 }
 0x48b   : > { %v724_v11 = vpack.c.bf16 %v717_v10, %v717_v10  ;;  %2021 = vmatprep.subr.bf16.mxu1 %v2438_v0 }
 0x48c   : > { %v2000_v12 = vpop.f32.mrf.mxu1  ;;  %v2005_v13 = vpop.f32.mrf.mxu0 }
 0x48d   : > { %2016 = vmatmul.mubr.msk.bf16.vlgmr.msra.gmra.mxu0 %vm502_vm2, %v724_v11  ;;  %v944_v13 = vsub.s32 5, %v2697_v6 }
 0x48e   : > { %v720_v14 = vpop.f32.mrf.mxu0  ;;  %2035 = vmatprep.mubr.msk.bf16.mxu0 %vm2439_vm0, %v2438_v0  ;;  %2022 = vmatpush3.bf16.msra.mxu1 %v2199_v39 }
 0x48f   : > { %2039 = vmatprep.subr.bf16.mxu1 %v2438_v0  ;;  %2028 = vmatpush3.bf16.msra.mxu0 %v2200_v51  ;;  %v945_v14 = vrot.slane %v2700_v8, %v944_v13 }
 0x490   : > { %v2006_v15 = vpop.f32.mrf.mxu0  ;;  %2029 = vmatprep.subr.bf16.mxu0 %v2438_v0 }
 0x493   : > { %2030 = vmatpush3.bf16.msra.mxu0 %v2201_v52 }
 0x494   : > { %2031 = vmatprep.subr.bf16.mxu0 %v2438_v0 }
 0x497   : > { %2032 = vmatpush3.bf16.msra.mxu0 %v2202_v53 }
 0x498   : > { %2033 = vmatprep.subr.bf16.mxu0 %v2438_v0 }
 0x49b   : > { %2034 = vmatpush3.bf16.msra.mxu0 %v2203_v54 }
 0x49c   : > { %2053 = vmatprep.subr.bf16.mxu0 %v2438_v0 }
 0x549   : > { %v772_v16 = vpop.f32.mrf.mxu1 }
 0x54a   : > { %v827_v22 = vsel %vm436_vm1, %v772_v16, 0.0 }
 0x54b   : > { %v2011_v18 = vpop.f32.mrf.mxu1 }
 0x54d   : > { %v775_v19 = vpop.f32.mrf.mxu1  ;;  %v821_v20 = vpop.f32.mrf.mxu0 }
 0x54e   : > { %v828_v23 = vsel %vm436_vm1, %v821_v20, 0.0 }
 0x54f   : > { %v829_v24 = vadd.f32 %v828_v23, %v827_v22  ;;  %v2012_v26 = vpop.f32.mrf.mxu1  ;;  %v2017_v27 = vpop.f32.mrf.mxu0 }
 0x551   : > { %v834_v28 = vadd.f32 %v833_v21, %v829_v24  ;;  %v824_v29 = vpop.f32.mrf.mxu0 }
 0x552   : > { %v2204_v29 = vld [vmem:[%s2995_s2 + $0x18] sm:$0xff]  }
 0x553   : > { %v2018_v30 = vpop.f32.mrf.mxu0  ;;  %v835_v31 = vadd.f32 %v834_v28, %v2688_v3 }
 0x554   : > { %v2205_v30 = vld [vmem:[%s2995_s2 + $0x10] sm:$0xff]  }
 0x555   : > { %v836_v32 = vsel %vm436_vm1, %v835_v31, 0.0 }
 0x556   : > { %837 = vadd.xlane.f32.xlu1 %v836_v32 }
 0x5df   : > { %v838_v33 = vpop.xlane.xlu1 %837 }
 0x5e0   : > { %v840_v34 = vmul.f32 0.03125, %v838_v33 }
 0x5e2   : > { %v841_v35 = vsub.f32 %v835_v31, %v840_v34  ;;  %v1030_v34 = vsub.s32 6, %v2697_v6 }
 0x5e4   : > { %v842_v36 = vmul.f32 %v841_v35, %v841_v35 }
 0x5e6   : > { %v843_v37 = vsel %vm436_vm1, %v842_v36, 0.0  ;;  %v1031_v36 = vrot.slane %v2700_v8, %v1030_v34 }
 0x5e7   : > { %844 = vadd.xlane.f32.xlu0 %v843_v37 }
 0x670   : > { %v845_v3 = vpop.xlane.xlu0 %844 }
 0x671   : > { %v846_v40 = vmul.f32 0.03125, %v845_v3 }
 0x673   : > { %v847_v41 = vadd.f32 1e-12, %v846_v40 }
 0x675   : > { %2224 = vrsqrt.f32 %v847_v41 }
 0x682   : > { %v2225_v45 = vpop.eup %2224 }
 0x683   : > { %v849_v46 = vmul.f32 %v2225_v45, %v841_v35  ;;  %v1035_v35 = vsub.s32 7, %v2697_v6 }
 0x685   : > { %v854_v48 = vmul.f32 %v853_v44, %v849_v46  ;;  %v1036_v39 = vrot.slane %v2700_v8, %v1035_v35  ;;  %v2834_v44 = vld [vmem:[#allocation7 + $0x8] sm:$0xff] }
 0x686   : > { %v1049_v45 = vrot.slane %v2834_v44, %v422_v7 }
 0x687   : > { %v859_v49 = vadd.f32 %v858_v47, %v854_v48 }
 0x689   : > { %v860_v50 = vpack.c.bf16 %v859_v49, %v859_v49 }
 0x68b   : > { %2024 = vmatmul.mubr.msk.bf16.vlgmr.msra.gmra.mxu1 %vm436_vm1, %v860_v50 }
 0x68c   : > { %2043 = vmatprep.mubr.msk.bf16.mxu1 %vm2439_vm0, %v2438_v0  ;;  %2040 = vmatpush3.bf16.msra.mxu1 %v2204_v29 }
 0x68d   : > { %2041 = vmatprep.subr.bf16.mxu1 %v2438_v0 }
 0x690   : > { %2042 = vmatpush3.bf16.msra.mxu1 %v2205_v30 }
 0x691   : > { %2047 = vmatprep.subr.bf16.mxu1 %v2438_v0 }
 0x74b   : > { %v918_v57 = vpop.f32.mrf.mxu1 }
 0x74c   : > { %v919_v58 = vadd.f32 %v918_v57, %v868_v56 }
 0x74d   : > { %v2025_v59 = vpop.f32.mrf.mxu1 }
 0x74e   : > { %v924_v60 = vmul.f32 %v919_v58, %v919_v58 }
 0x74f   : > { %v921_v61 = vpop.f32.mrf.mxu1 }
 0x750   : > { %v925_v62 = vmul.f32 %v924_v60, %v919_v58 }
 0x751   : > { %v2026_v63 = vpop.f32.mrf.mxu1 }
 0x752   : > { %v926_v1 = vmul.f32 0.044715, %v925_v62 }
 0x754   : > { %v927_v2 = vadd.f32 %v926_v1, %v919_v58 }
 0x756   : > { %v928_v4 = vmul.f32 0.7978846, %v927_v2 }
 0x758   : > { %2226 = vtanh.f32 %v928_v4 }
 0x765   : > { %v2227_v5 = vpop.eup %2226 }
 0x766   : > { %v930_v9 = vadd.f32 1.0, %v2227_v5 }
 0x768   : > { %v931_v10 = vmul.f32 0.5, %v930_v9 }
 0x76a   : > { %v932_v11 = vmul.f32 %v931_v10, %v919_v58 }
 0x76c   : > { %v933_v12 = vpack.c.bf16 %v932_v11, %v932_v11 }
 0x76e   : > { %2036 = vmatmul.mubr.msk.bf16.vlgmr.msra.gmra.mxu0 %vm970_vm5, %v933_v12 }
 0x76f   : > { %2055 = vmatprep.mubr.msk.bf16.mxu0 %vm2439_vm0, %v2438_v0 }
 0x82e   : > { %v1008_v15 = vpop.f32.mrf.mxu0 }
 0x82f   : > { %v1009_v16 = vadd.f32 %v1008_v15, %v945_v14 }
 0x830   : > { %v2037_v18 = vpop.f32.mrf.mxu0 }
 0x831   : > { %v1014_v19 = vadd.f32 %v1009_v16, %v859_v49 }
 0x832   : > { %v1011_v20 = vpop.f32.mrf.mxu0 }
 0x833   : > { %v1015_v21 = vsel %vm436_vm1, %v1014_v19, 0.0 }
 0x834   : > { %1016 = vadd.xlane.f32.xlu0 %v1015_v21  ;;  %v2038_v22 = vpop.f32.mrf.mxu0 }
 0x8bd   : > { %v1017_v23 = vpop.xlane.xlu0 %1016 }
 0x8be   : > { %v1018_v24 = vmul.f32 0.03125, %v1017_v23 }
 0x8c0   : > { %v1019_v26 = vsub.f32 %v1014_v19, %v1018_v24 }
 0x8c2   : > { %v1020_v27 = vmul.f32 %v1019_v26, %v1019_v26 }
 0x8c4   : > { %v1021_v28 = vsel %vm436_vm1, %v1020_v27, 0.0 }
 0x8c5   : > { %1022 = vadd.xlane.f32.xlu1 %v1021_v28 }
 0x94e   : > { %v1023_v31 = vpop.xlane.xlu1 %1022 }
 0x94f   : > { %v1024_v32 = vmul.f32 0.03125, %v1023_v31 }
 0x951   : > { %v1025_v33 = vadd.f32 1e-12, %v1024_v32 }
 0x953   : > { %2228 = vrsqrt.f32 %v1025_v33 }
 0x960   : > { %v2229_v37 = vpop.eup %2228 }
 0x961   : > { %v1027_v38 = vmul.f32 %v2229_v37, %v1019_v26 }
 0x963   : > { %v1032_v3 = vmul.f32 %v1031_v36, %v1027_v38 }
 0x965   : > { %v2827_v40 = vadd.f32 %v1036_v39, %v1032_v3 }
 0x967   : > { %v1040_v41 = vpack.c.bf16 %v2827_v40, %v2827_v40 }
 0x969   : > { %2044 = vmatmul.mubr.msk.bf16.vlgmr.msra.gmra.mxu1 %vm436_vm1, %v1040_v41 }
 0x96a   : > { %2049 = vmatprep.mubr.msk.bf16.mxu1 %vm2439_vm0, %v2438_v0 }
 0xa29   : > { %v1099_v46 = vpop.f32.mrf.mxu1 }
 0xa2a   : > { %v1100_v47 = vadd.f32 %v1099_v46, %v1049_v45  ;;  %v2206_v45 = vld [vmem:[%s2996_s3 + $0x10] sm:$0xff]   ;;  %v2207_v46 = vld [vmem:[%s2996_s3 + $0x18] sm:$0xff]  }
 0xa2b   : > { %v2045_v8 = vpop.f32.mrf.mxu1 }
 0xa2c   : > { %1112 = vrot.lane.b32.xlu1 %v1100_v47, %s2442_s20  ;;  %1109 = vrot.lane.b32.xlu0 %v1100_v47, %s2441_s14  ;;  %v1121_v58 = vpack.c.bf16 %v1100_v47, %v1100_v47  ;;  %s1923_s20 = sshll.u32 %s2517_s13, 7 }
 0xa2d   : > { %v1102_v48 = vpop.f32.mrf.mxu1  ;;  %s2950_s28 = scalar_lea.hbm %s3002_s9, %s1923_s20 }
 0xa2f   : > { %v2046_v49 = vpop.f32.mrf.mxu1 }
 0xa30   : > { %1106 = vrot.lane.b32.xlu1 %v1100_v47, %s2440_s6 }
 0xa9e   : > { %v1113_v50 = vpop.permute.xlu1 %1112  ;;  %v1110_v51 = vpop.permute.xlu0 %1109 }
 0xa9f   : > { %v1124_v52 = vpack.c.bf16 %v1113_v50, %v1113_v50  ;;  %v1123_v53 = vpack.c.bf16 %v1110_v51, %v1110_v51 }
 0xaa1   : > { %v1177_v54 = vsel %vm502_vm2, %v1124_v52, 0  ;;  %v1131_v56 = vsel %vm502_vm2, %v1123_v53, 0 }
 0xaa2   : > { %2054 = vmatpush3.bf16.xpose.msra.mxu0 %v1177_v54  ;;  %2048 = vmatpush3.bf16.xpose.msra.mxu1 %v1131_v56  ;;  %v1107_v7 = vpop.permute.xlu1 %1106 }
 0xaa3   : > { %2059 = vmatprep.subr.bf16.mxu1 %v2438_v0  ;;  %2065 = vmatprep.subr.bf16.mxu0 %v2438_v0  ;;  %v1122_v57 = vpack.c.bf16 %v1107_v7, %v1107_v7 }
 0xaa9   : > { %2050 = vmatmul.mubr.msk.bf16.vlgmr.msra.gmra.mxu1 %vm502_vm2, %v1121_v58  ;;  %2056 = vmatmul.mubr.msk.bf16.vlgmr.msra.gmra.mxu0 %vm502_vm2, %v1122_v57 }
 0xaaa   : > { %2061 = vmatprep.mubr.msk.bf16.mxu1 %vm2439_vm0, %v2438_v0  ;;  %2067 = vmatprep.mubr.msk.bf16.mxu0 %vm2439_vm0, %v2438_v0 }
 0xb69   : > { %v1167_v59 = vpop.f32.mrf.mxu1  ;;  %v1213_v60 = vpop.f32.mrf.mxu0 }
 0xb6a   : > { %v1219_v61 = vmul.f32 0.25, %v1167_v59  ;;  %v1220_v62 = vmul.f32 0.25, %v1213_v60  ;;  %v1450_v60 = vrot.slane %v2834_v44, %v832_v17 }
 0xb6b   : > { %v2051_v63 = vpop.f32.mrf.mxu1  ;;  %v2057_v1 = vpop.f32.mrf.mxu0 }
 0xb6c   : > { %v1221_v2 = vadd.f32 %v2720_v25, %v1219_v61  ;;  %v1222_v4 = vadd.f32 %v2720_v25, %v1220_v62 }
 0xb6d   : > { %v1170_v5 = vpop.f32.mrf.mxu1  ;;  %v1216_v9 = vpop.f32.mrf.mxu0 }
 0xb6e   : > { %v1223_v10 = vsel %vm605_vm3, %v1221_v2, -inf  ;;  %v1226_v11 = vsel %vm605_vm3, %v1222_v4, -inf }
 0xb6f   : > { %1224 = vmax.xlane.f32.xlu0 %v1223_v10  ;;  %v2052_v12 = vpop.f32.mrf.mxu1  ;;  %1227 = vmax.xlane.f32.xlu1 %v1226_v11  ;;  %v2058_v14 = vpop.f32.mrf.mxu0 }
 0xb80   : > { %1115 = vrot.lane.b32.xlu1 %v1100_v47, %s2444_s7 }
 0xbf8   : > { %v1225_v15 = vpop.xlane.xlu0 %1224  ;;  %v1228_v16 = vpop.xlane.xlu1 %1227 }
 0xbf9   : > { %v1229_v18 = vsub.f32 %v1221_v2, %v1225_v15  ;;  %v1230_v19 = vsub.f32 %v1222_v4, %v1228_v16 }
 0xbfb   : > { %v1231_v20 = vmul.f32 1.442695, %v1229_v18  ;;  %v1233_v21 = vmul.f32 1.442695, %v1230_v19  ;;  %v2208_v18 = vld [vmem:[%s2997_s4 + $0x18] sm:$0xff]   ;;  %v2209_v19 = vld [vmem:[%s2997_s4 + $0x10] sm:$0xff]  }
 0xbfc   : > { %v1116_v22 = vpop.permute.xlu1 %1115 }
 0xbfd   : > { %2230 = vpow2.f32 %v1231_v20  ;;  %v1125_v25 = vpack.c.bf16 %v1116_v22, %v1116_v22  ;;  %v1469_v22 = vrot.slane %v2834_v44, %v852_v42  ;;  %v2211_v42 = vld [vmem:[%s2998_s5 + $0x30] sm:$0xff]  }
 0xbfe   : > { %2232 = vpow2.f32 %v1233_v21 }
 0xbff   : > { %v1251_v23 = vsel %vm633_vm4, %v1125_v25, 0 }
 0xc00   : > { %2060 = vmatpush3.bf16.msra.mxu1 %v1251_v23 }
 0xc01   : > { %2071 = vmatprep.subr.bf16.mxu1 %v2438_v0 }
 0xc0a   : > { %v2231_v24 = vpop.eup %2230 }
 0xc0b   : > { %v1235_v26 = vsel %vm605_vm3, %v2231_v24, 0.0  ;;  %v2233_v27 = vpop.eup %2232 }
 0xc0c   : > { %1236 = vadd.xlane.f32.xlu0 %v1235_v26  ;;  %v1238_v28 = vsel %vm605_vm3, %v2233_v27, 0.0 }
 0xc10   : > { %1239 = vadd.xlane.f32.xlu0 %v1238_v28 }
 0xc26   : > { %1118 = vrot.lane.b32.xlu0 %v1100_v47, %s2443_s19  ;;  %s410_s19 = scalar_lea.vmem [#allocation10], %s1855_s21  ;;  %s2445_s21 = smov [#allocation10]  }
 0xc27   : > { %s1737_s7 = sshll.u32 %s410_s19, 4  ;;  %s2356_s18 = sshll.u32 %s2445_s21, 4  ;;  %s2952_s7 = int_to_ptr.vmem [resolvable:$true] %s1737_s7  ;;  %s2357_s18 = int_to_ptr.vmem [resolvable:$false] %s2356_s18 }
 0xc28   : > { %s2352_s13 = scalar_lea.vmem %s2952_s7, 128  ;;  %s2358_s22 = scalar_lea.vmem %s2357_s18, 256 }
 0xc29   : > { %p2353_p12 = scmp.ne.s32.totalorder %s2952_s7, %s2352_s13  ;;  %p2359_p5 = scmp.lt.s32.totalorder %s2952_s7, %s2357_s18 }
 0xc2a   : > { %p2360_p1 = scmp.lt.s32.totalorder %s2358_s22, %s2352_s13 }
 0xc2b   : > { %p2354_p9 = pnand %p2353_p12, %p3033_p3 }
 0xc2c   : > { %p2361_p4 = por %p2360_p1, %p2359_p5 }
 0xc2d   : > { %p2355_p13 = pneg %p2354_p9 }
 0xc2f   : > { %p2362_p7 = pnand %p2361_p4, %p2355_p13 }
 0xc95   : > { %v1237_v29 = vpop.xlane.xlu0 %1236 }
 0xc96   : > { %2234 = vrcp.f32 %v1237_v29  ;;  %v2210_v29 = vld [vmem:[%s2998_s5 + $0x38] sm:$0xff]  }
 0xc99   : > { %v1240_v30 = vpop.xlane.xlu0 %1239 }
 0xc9a   : > { %2236 = vrcp.f32 %v1240_v30  ;;  %v2213_v30 = vld [vmem:[%s2998_s5 + $0x20] sm:$0xff]  }
 0xc9d   : > { %v1119_v31 = vpop.permute.xlu0 %1118 }
 0xc9e   : > { %v1126_v32 = vpack.c.bf16 %v1119_v31, %v1119_v31  ;;  %v1485_v31 = vrot.slane %v2834_v44, %v867_v55  ;;  %v1563_v55 = vrot.slane %v2834_v44, %v944_v13 }
 0xca0   : > { %v1297_v33 = vsel %vm633_vm4, %v1126_v32, 0 }
 0xca1   : > { %2066 = vmatpush3.bf16.msra.mxu0 %v1297_v33 }
 0xca2   : > { %2077 = vmatprep.subr.bf16.mxu0 %v2438_v0 }
 0xca3   : > { %v2235_v36 = vpop.eup %2234 }
 0xca4   : > { %v1243_v37 = vmul.f32 %v2235_v36, %v2231_v24  ;;  %v1474_v24 = vrot.slane %v2834_v44, %v857_v43  ;;  %v2212_v43 = vld [vmem:[%s2998_s5 + $0x28] sm:$0xff]  }
 0xca6   : > { %v1245_v38 = vpack.c.bf16 %v1243_v37, %v1243_v37 }
 0xca7   : > { %v2237_v39 = vpop.eup %2236 }
 0xca8   : > { %2062 = vmatmul.mubr.msk.bf16.vlgmr.msra.gmra.mxu1 %vm605_vm3, %v1245_v38  ;;  %v1244_v3 = vmul.f32 %v2237_v39, %v2233_v27 }
 0xca9   : > { %2073 = vmatprep.mubr.msk.bf16.mxu1 %vm2439_vm0, %v2438_v0  ;;  %2072 = vmatpush3.bf16.msra.mxu1 %v2206_v45 }
 0xcaa   : > { %v1246_v41 = vpack.c.bf16 %v1244_v3, %v1244_v3  ;;  %2083 = vmatprep.subr.bf16.mxu1 %v2438_v0 }
 0xcac   : > { %2068 = vmatmul.mubr.msk.bf16.vlgmr.msra.gmra.mxu0 %vm605_vm3, %v1246_v41 }
 0xcad   : > { %2079 = vmatprep.mubr.msk.bf16.mxu0 %vm2439_vm0, %v2438_v0  ;;  %2078 = vmatpush3.bf16.msra.mxu0 %v2207_v46 }
 0xcae   : > { %2091 = vmatprep.subr.bf16.mxu0 %v2438_v0 }
 0xd68   : > { %v1287_v47 = vpop.f32.mrf.mxu1 }
 0xd69   : > { %v1339_v8 = vpack.c.bf16 %v1287_v47, %v1287_v47 }
 0xd6a   : > { %v2063_v48 = vpop.f32.mrf.mxu1 }
 0xd6b   : > { %2074 = vmatmul.mubr.msk.bf16.vlgmr.msra.gmra.mxu1 %vm502_vm2, %v1339_v8 }
 0xd6c   : > { %v1290_v49 = vpop.f32.mrf.mxu1  ;;  %v1333_v50 = vpop.f32.mrf.mxu0  ;;  %2087 = vmatprep.mubr.msk.bf16.mxu1 %vm2439_vm0, %v2438_v0  ;;  %2084 = vmatpush3.bf16.msra.mxu1 %v2208_v18 }
 0xd6d   : > { %v1340_v51 = vpack.c.bf16 %v1333_v50, %v1333_v50  ;;  %2085 = vmatprep.subr.bf16.mxu1 %v2438_v0 }
 0xd6e   : > { %v2064_v52 = vpop.f32.mrf.mxu1  ;;  %v2069_v53 = vpop.f32.mrf.mxu0 }
 0xd6f   : > { %2080 = vmatmul.mubr.msk.bf16.vlgmr.msra.gmra.mxu0 %vm502_vm2, %v1340_v51 }
 0xd70   : > { %v1336_v54 = vpop.f32.mrf.mxu0  ;;  %2099 = vmatprep.mubr.msk.bf16.mxu0 %vm2439_vm0, %v2438_v0  ;;  %2086 = vmatpush3.bf16.msra.mxu1 %v2209_v19 }
 0xd71   : > { %2103 = vmatprep.subr.bf16.mxu1 %v2438_v0  ;;  %2092 = vmatpush3.bf16.msra.mxu0 %v2210_v29 }
 0xd72   : > { %v2070_v56 = vpop.f32.mrf.mxu0  ;;  %2093 = vmatprep.subr.bf16.mxu0 %v2438_v0 }
 0xd75   : > { %2094 = vmatpush3.bf16.msra.mxu0 %v2211_v42 }
 0xd76   : > { %2095 = vmatprep.subr.bf16.mxu0 %v2438_v0 }
 0xd79   : > { %2096 = vmatpush3.bf16.msra.mxu0 %v2212_v43 }
 0xd7a   : > { %2097 = vmatprep.subr.bf16.mxu0 %v2438_v0 }
 0xd7d   : > { %2098 = vmatpush3.bf16.msra.mxu0 %v2213_v30 }
 0xe2b   : > { %v1389_v7 = vpop.f32.mrf.mxu1 }
 0xe2c   : > { %v1444_v61 = vsel %vm436_vm1, %v1389_v7, 0.0 }
 0xe2d   : > { %v2075_v57 = vpop.f32.mrf.mxu1 }
 0xe2f   : > { %v1392_v58 = vpop.f32.mrf.mxu1  ;;  %v1438_v59 = vpop.f32.mrf.mxu0 }
 0xe30   : > { %v1445_v62 = vsel %vm436_vm1, %v1438_v59, 0.0 }
 0xe31   : > { %v1446_v63 = vadd.f32 %v1445_v62, %v1444_v61  ;;  %v2076_v1 = vpop.f32.mrf.mxu1  ;;  %v2081_v2 = vpop.f32.mrf.mxu0 }
 0xe32   : > { %v2215_v1 = vld [vmem:[#allocation8] sm:$0xff]  }
 0xe33   : > { %v1451_v4 = vadd.f32 %v1450_v60, %v1446_v63  ;;  %v1441_v5 = vpop.f32.mrf.mxu0  ;;  %v2214_v63 = vld [vmem:[#allocation8 + $0x8] sm:$0xff]  }
 0xe34   : > { %v1648_v5 = vrot.slane %v2834_v44, %v1030_v34 }
 0xe35   : > { %v2082_v9 = vpop.f32.mrf.mxu0  ;;  %v1452_v10 = vadd.f32 %v1451_v4, %v2827_v40 }
 0xe37   : > { %v1453_v11 = vsel %vm436_vm1, %v1452_v10, 0.0 }
 0xe38   : > { %1454 = vadd.xlane.f32.xlu1 %v1453_v11  ;;  %v1653_v11 = vrot.slane %v2834_v44, %v1035_v35 }
 0xec1   : > { %v1455_v12 = vpop.xlane.xlu1 %1454 }
 0xec2   : > { %v1456_v14 = vmul.f32 0.03125, %v1455_v12 }
 0xec4   : > { %v1457_v15 = vsub.f32 %v1452_v10, %v1456_v14 }
 0xec6   : > { %v1458_v16 = vmul.f32 %v1457_v15, %v1457_v15 }
 0xec8   : > { %v1459_v17 = vsel %vm436_vm1, %v1458_v16, 0.0 }
 0xec9   : > { %1460 = vadd.xlane.f32.xlu0 %v1459_v17 }
 0xf52   : > { %v1461_v40 = vpop.xlane.xlu0 %1460 }
 0xf53   : > { %v1462_v20 = vmul.f32 0.03125, %v1461_v40 }
 0xf55   : > { %v1463_v21 = vadd.f32 1e-12, %v1462_v20 }
 0xf57   : > { %2238 = vrsqrt.f32 %v1463_v21 }
 0xf64   : > { %v2239_v25 = vpop.eup %2238 }
 0xf65   : > { %v1465_v23 = vmul.f32 %v2239_v25, %v1457_v15  ;;  %v1918_v15 = vld [vmem:[%s3001_s8] ss:$0 sm:$0xff] }
 0xf67   : > { %v1470_v26 = vmul.f32 %v1469_v22, %v1465_v23 }
 0xf69   : > { %v1475_v27 = vadd.f32 %v1474_v24, %v1470_v26 }
 0xf6b   : > { %v1476_v28 = vpack.c.bf16 %v1475_v27, %v1475_v27 }
 0xf6d   : > { %2088 = vmatmul.mubr.msk.bf16.vlgmr.msra.gmra.mxu1 %vm436_vm1, %v1476_v28 }
 0xf6e   : > { %2107 = vmatprep.mubr.msk.bf16.mxu1 %vm2439_vm0, %v2438_v0  ;;  %2104 = vmatpush3.bf16.msra.mxu1 %v2214_v63 }
 0xf6f   : > { %2105 = vmatprep.subr.bf16.mxu1 %v2438_v0 }
 0xf72   : > { %2106 = vmatpush3.bf16.msra.mxu1 %v2215_v1 }
0x102d   : > { %v1535_v32 = vpop.f32.mrf.mxu1 }
0x102e   : > { %v1536_v33 = vadd.f32 %v1535_v32, %v1485_v31 }
0x102f   : > { %v2089_v36 = vpop.f32.mrf.mxu1 }
0x1030   : > { %v1541_v37 = vmul.f32 %v1536_v33, %v1536_v33 }
0x1031   : > { %v1538_v38 = vpop.f32.mrf.mxu1 }
0x1032   : > { %v1542_v39 = vmul.f32 %v1541_v37, %v1536_v33 }
0x1033   : > { %v2090_v3 = vpop.f32.mrf.mxu1 }
0x1034   : > { %v1543_v41 = vmul.f32 0.044715, %v1542_v39 }
0x1036   : > { %v1544_v45 = vadd.f32 %v1543_v41, %v1536_v33 }
0x1038   : > { %v1545_v46 = vmul.f32 0.7978846, %v1544_v45 }
0x103a   : > { %2240 = vtanh.f32 %v1545_v46 }
0x1047   : > { %v2241_v47 = vpop.eup %2240 }
0x1048   : > { %v1547_v8 = vadd.f32 1.0, %v2241_v47 }
0x104a   : > { %v1548_v48 = vmul.f32 0.5, %v1547_v8 }
0x104c   : > { %v1549_v49 = vmul.f32 %v1548_v48, %v1536_v33 }
0x104e   : > { %v1550_v50 = vpack.c.bf16 %v1549_v49, %v1549_v49 }
0x1050   : > { %2100 = vmatmul.mubr.msk.bf16.vlgmr.msra.gmra.mxu0 %vm970_vm5, %v1550_v50 }
0x1110   : > { %v1625_v51 = vpop.f32.mrf.mxu0 }
0x1111   : > { %v1626_v52 = vadd.f32 %v1625_v51, %v1563_v55 }
0x1112   : > { %v2101_v53 = vpop.f32.mrf.mxu0 }
0x1113   : > { %v1631_v54 = vadd.f32 %v1626_v52, %v1475_v27 }
0x1114   : > { %v1628_v56 = vpop.f32.mrf.mxu0 }
0x1115   : > { %v1632_v7 = vsel %vm436_vm1, %v1631_v54, 0.0 }
0x1116   : > { %1633 = vadd.xlane.f32.xlu1 %v1632_v7  ;;  %v2102_v57 = vpop.f32.mrf.mxu0 }
0x119f   : > { %v1634_v58 = vpop.xlane.xlu1 %1633 }
0x11a0   : > { %v1635_v59 = vmul.f32 0.03125, %v1634_v58 }
0x11a2   : > { %v1636_v60 = vsub.f32 %v1631_v54, %v1635_v59 }
0x11a4   : > { %v1637_v61 = vmul.f32 %v1636_v60, %v1636_v60 }
0x11a6   : > { %v1638_v62 = vsel %vm436_vm1, %v1637_v61, 0.0 }
0x11a7   : > { %1639 = vadd.xlane.f32.xlu0 %v1638_v62 }
0x1230   : > { %v1640_v13 = vpop.xlane.xlu0 %1639 }
0x1231   : > { %v1641_v2 = vmul.f32 0.03125, %v1640_v13 }
0x1233   : > { %v1642_v4 = vadd.f32 1e-12, %v1641_v2 }
0x1235   : > { %2242 = vrsqrt.f32 %v1642_v4 }
0x1242   : > { %v2243_v9 = vpop.eup %2242 }
0x1243   : > { %v1644_v10 = vmul.f32 %v2243_v9, %v1636_v60 }
0x1245   : > { %v1649_v12 = vmul.f32 %v1648_v5, %v1644_v10 }
0x1247   : > { %v1654_v14 = vadd.f32 %v1653_v11, %v1649_v12 }
0x1249   : > { %v1655_v0 = vpack.c.bf16 %v1654_v14, %v1654_v14 }
0x124b   : > { %2108 = vmatmul.mubr.msk.bf16.vlgmr.msra.gmra.mxu1 %vm436_vm1, %v1655_v0 }
0x130b   : > { %v1716_v34 = vpop.f32.mrf.mxu1 }
0x130c   : > { %v1717_v16 = vadd.f32 %v1918_v15, %v1716_v34 }
0x130d   : > { %v2109_v6 = vpop.f32.mrf.mxu1 }
0x130e   : > { %1722 = vst [vmem:[%s410_s19] sm:$0xff] %v1717_v16 }
0x130f   : > { %v1719_v35 = vpop.f32.mrf.mxu1 }
0x1310   : > { %2365 = shalt.err (!%p2362_p7)
}
0x1311   : > { %s2366_s17 = scalar_lea.hbm %s2950_s28, 128  ;;  %s2370_s29 = scalar_lea.hbm %s3002_s9, 256 }
0x1312   : > { %p2367_p10 = scmp.ne.s32.totalorder %s2950_s28, %s2366_s17  ;;  %p2371_p11 = scmp.lt.s32.totalorder %s2950_s28, %s3002_s9 }
0x1313   : > { %p2372_p2 = scmp.lt.s32.totalorder %s2370_s29, %s2366_s17 }
0x1314   : > { %p2368_p0 = pnand %p2367_p10, %p3033_p3 }
0x1315   : > { %p2373_p6 = por %p2372_p2, %p2371_p11 }
0x1316   : > { %p2369_p8 = pneg %p2368_p0 }
0x1318   : > { %p2374_p12 = pnand %p2373_p6, %p2369_p8 }
0x131a   : > { %2377 = shalt.err (!%p2374_p12)
}
0x131b   : > { %2123 = dma.vmem_to_hbm [thread:$0]  (%p3033_p3), %s2952_s7, 128, %s2950_s28, %s1724_s11   ;;  %v2110_v44 = vpop.f32.mrf.mxu1 }
0x131c PF: > { %s1749_s6 = sand.u32 1, %s2416_s30   ;;  %p3034_p9 = scmp.ne.s32.totalorder %s3015_s16, 0 }
0x131d   : > { %p3035_p13 = scmp.ge.s32.totalorder %s2428_s12, 2  ;;  %s1750_s14 = scalar_lea.sflag [#allocation4], %s1749_s6 }
0x131f   : > { %p2140_p5 = pnand %p3035_p13, %p3034_p9 }
0x1321   : > { %p2141_p1 = pneg %p2140_p5 }
0x1323   : > { %2411 = dma.done.wait (%p2141_p1), %s1750_s14, 128  }
0x1324   : > { %2413 = vsyncadd (%p2141_p1), %s1750_s14, 4294967168  ;;  %s3036_s12 = sld [smem:[#allocation17_spill]]  ;;  %s3039_s30 = smov %s2420_s10 }
0x1325   : > { %s3037_s20 = sld [smem:[#allocation16_spill]] }
0x1326   : > { %s3038_s11 = sld [smem:[#allocation18_spill]] }
0x132a   : > { %p26_p4 = scmp.ge.s32.totalorder %s3036_s12, 4  }
0x132b   : > { %s3040_s10 = smov %s3037_s20 }
0x132c   :  { %28 = sbr.rel (!%p26_p4) target bundleno = 12 (0xc), region = 127 }
0x1331   :  { %1755 = vsyncpa [#allocation3], 1 }
0x1332   :  { %1757 = vsyncpa [#allocation3 + $0x1], 1 }
0x1333   :  { %1758 = vsyncpa [#allocation6], 1 }
0x1334   :  { %1760 = vsyncpa [#allocation6 + $0x1], 1 }
0x1335   :  { %1761 = vsyncpa [#allocation9], 1 }
0x1336   :  { %1762 = vsyncpa [#allocation4], 1 }
0x1337   :  { %1764 = vsyncpa [#allocation4 + $0x1], 1 }

</bundles_post_ra>
